<compile_context>
chip_gen: v5e
topology: v5e:2x2
jax: 0.10.0
libtpu: 0.0.40
codegen_flags: <defaults>
</compile_context>

<pallas_src>
import functools

import jax
import jax.numpy as jnp
from jax.experimental import pallas as pl
from jax.experimental.pallas import tpu as pltpu


def _patch_recovery_kernel(x_ref, w_ref, b_ref, o_ref, *, oc_count, d):
    """One grid step: deconv of `tile_h` coarse rows of one batch element.

    x_ref: (tile_h, W*C)           z = Z-1 pixels, row h, cols (w, c)      [f32]
    w_ref: (W*C, OC*pH*W*pW)       block-diagonal deconv weight            [f32]
    b_ref: (1, OC*pH*W*pW)         bias, repeated per (ph, w, pw)          [f32]
    o_ref: (OC, tile_h, pH*W*pW)   lane-dense output block                 [f32]
    """
    acc = jnp.dot(x_ref[...], w_ref[...],
                  preferred_element_type=jnp.float32,
                  precision=jax.lax.Precision.HIGHEST)
    acc = acc + b_ref[...]                      # bias: one add per tile
    # Columns of `acc` are already ordered (oc, ph, w, pw): store one
    # full-width (tile_h, pH*W*pW) slab per output channel (128-lane aligned).
    for oc in range(oc_count):                  # OC is tiny (surface channels)
        o_ref[oc] = acc[:, oc * d:(oc + 1) * d]


def _pick_tile_h(H, W, max_pixels=2048):
    """Full H when it fits; else the largest 8-aligned divisor of H under budget."""
    if H * W <= max_pixels:
        return H
    divs8 = [d for d in range(8, H + 1, 8) if H % d == 0 and d * W <= max_pixels]
    if divs8:
        return max(divs8)
    divs = [d for d in range(1, H + 1) if H % d == 0 and d * W <= max_pixels]
    return max(divs) if divs else 1


def patch_recovery_forward(x, weight, bias, input_shape, patch_shape, *, tile_h=None):
    """
    Args:
      x:       (B, Z*H*W, C) float32
      weight:  (C, OC, pH, pW) float32   (ConvTranspose2d weight layout)
      bias:    (OC,) float32
      input_shape: (Z, H, W)
      patch_shape: (pH, pW)
    Returns:
      (B, OC, H*pH, W*pW) float32  (NCHW, matching the PyTorch module)
    """
    Z, H, W = input_shape
    pH, pW = patch_shape
    B, L, C = x.shape
    assert L == Z * H * W, "x second dim must be Z*H*W"
    OC = weight.shape[1]

    D = pH * W * pW          # lane-dense output row length per (b, oc, h)
    WC = W * C               # lane-dense input row length per (b, z*H + h)
    NCOL = OC * D

    if tile_h is None:
        tile_h = _pick_tile_h(H, W)
    assert H % tile_h == 0, "tile_h must divide H"

    # ---- wrapper-side (one-time, tiny) parameter prep ----------------------
    # Block-diagonal expansion over the coarse width W (see module docstring):
    #   wmat[w'*C + c, ((oc*pH + ph)*W + w)*pW + pw] = delta(w', w) * K[c,oc,ph,pw]
    eye_w = jnp.eye(W, dtype=weight.dtype)
    wexp = jnp.einsum("vw,copq->vcopwq", eye_w, weight)       # (W, C, OC, pH, W, pW)
    wmat = wexp.reshape(WC, NCOL).astype(jnp.float32)
    bias_row = jnp.repeat(bias.astype(jnp.float32), D).reshape(1, NCOL)

    # Free (row-major adjacent) reshape: (B, Z*H*W, C) -> (B, Z*H, W*C).
    x2 = x.reshape(B, Z * H, WC)

    n_hblk = H // tile_h
    z_base = (Z - 1) * H // tile_h      # block offset selecting the z = Z-1 slice

    # Put the larger parallel extent first so v7x megacore splits evenly.
    hblk_major = n_hblk >= B
    grid = (n_hblk, B) if hblk_major else (B, n_hblk)

    def _coords(i, j):                  # grid coords -> (batch, h-block)
        return (j, i) if hblk_major else (i, j)

    def x_map(i, j):
        b, hb = _coords(i, j)
        return (b, z_base + hb, 0)

    def o_map(i, j):
        b, hb = _coords(i, j)
        return (b, 0, hb, 0)

    kernel = functools.partial(_patch_recovery_kernel, oc_count=OC, d=D)

    out4 = pl.pallas_call(
        kernel,
        out_shape=jax.ShapeDtypeStruct((B, OC, H, D), jnp.float32),
        grid_spec=pltpu.PrefetchScalarGridSpec(
            num_scalar_prefetch=0,
            grid=grid,
            in_specs=[
                # x2: each block = tile_h lane-dense rows of the z = Z-1 slice.
                pl.BlockSpec((None, tile_h, WC), x_map),
                # weight / bias: whole-array, resident across the whole grid.
                pl.BlockSpec((WC, NCOL), lambda i, j: (0, 0)),
                pl.BlockSpec((1, NCOL), lambda i, j: (0, 0)),
            ],
            out_specs=pl.BlockSpec((None, OC, tile_h, D), o_map),
        ),
        compiler_params=pltpu.CompilerParams(
            dimension_semantics=("parallel", "parallel"),
            vmem_limit_bytes=32 * 1024 * 1024,
        ),
    )(x2, wmat, bias_row)

    # (B, OC, H, pH*W*pW) -> (B, OC, H*pH, W*pW): adjacent-dim regroup, no copy.
    return out4.reshape(B, OC, H * pH, W * pW)


if __name__ == "__main__":
    # Small shapes consistent with the module's forward.
    Z, H, W = 2, 32, 8
    pH, pW = 4, 4
    dim = 32
    output_channels = 2
    B = 2

    key = jax.random.PRNGKey(0)
    kx, kw, kb = jax.random.split(key, 3)

    x = jax.random.normal(kx, (B, Z * H * W, dim), dtype=jnp.float32)
    # ConvTranspose2d weight layout: (in_channels, out_channels, kH, kW).
    weight = jax.random.normal(kw, (dim, output_channels, pH, pW),
                               dtype=jnp.float32) * 0.05
    bias = jax.random.normal(kb, (output_channels,), dtype=jnp.float32) * 0.05

    out = patch_recovery_forward(x, weight, bias, (Z, H, W), (pH, pW))
    out = jax.block_until_ready(out)
    assert out.shape == (B, output_channels, H * pH, W * pW)

    # Pure-JAX f32 reference (exact ConvTranspose2d semantics for stride==kernel).
    x_last = x.reshape(B, Z, H, W, dim)[:, -1]                     # (B, H, W, C)
    ref = jnp.einsum("bhwc,coij->bohiwj", x_last, weight, precision="highest")
    ref = ref + bias[None, :, None, None, None, None]
    ref = ref.reshape(B, output_channels, H * pH, W * pW)

    max_err = float(jnp.max(jnp.abs(out - ref)))
    assert jnp.allclose(out, ref, atol=1e-4, rtol=1e-4), max_err

    print("KERNEL_OK")
</pallas_src>

<mosaic_0001>
module attributes {stable_mosaic.version = 11 : i64} {
  func.func @_patch_recovery_kernel(%arg0: i32, %arg1: i32, %arg2: memref<1x32x256xf32, #tpu.memory_space<vmem>>, %arg3: memref<256x256xf32, #tpu.memory_space<vmem>>, %arg4: memref<1x256xf32, #tpu.memory_space<vmem>>, %arg5: memref<1x2x32x128xf32, #tpu.memory_space<vmem>>) attributes {dimension_semantics = [#tpu.dimension_semantics<parallel>, #tpu.dimension_semantics<parallel>], iteration_bounds = array<i64: 2, 1>, scalar_prefetch = 0 : i64, scratch_operands = 0 : i64, tpu.core_type = #tpu.core_type<tc>, window_params = [{transform_indices = @transform_0, window_bounds = array<i64: 1, 32, 256>}, {pipeline_mode = #tpu.pipeline_mode<synchronous>, transform_indices = @transform_1, window_bounds = array<i64: 256, 256>}, {pipeline_mode = #tpu.pipeline_mode<synchronous>, transform_indices = @transform_2, window_bounds = array<i64: 1, 256>}, {transform_indices = @transform_3, window_bounds = array<i64: 1, 2, 32, 128>}]} {
    %c0 = arith.constant 0 : index
    %c0_0 = arith.constant 0 : index
    %c0_1 = arith.constant 0 : index
    %0 = vector.load %arg2[%c0, %c0_0, %c0_1] : memref<1x32x256xf32, #tpu.memory_space<vmem>>, vector<1x32x256xf32>
    %1 = vector.shape_cast %0 : vector<1x32x256xf32> to vector<32x256xf32>
    %c0_2 = arith.constant 0 : index
    %c0_3 = arith.constant 0 : index
    %2 = vector.load %arg3[%c0_2, %c0_3] : memref<256x256xf32, #tpu.memory_space<vmem>>, vector<256x256xf32>
    %cst = arith.constant dense<0.000000e+00> : vector<32x256xf32>
    %3 = tpu.matmul %1, %2, %cst {dimension_numbers = #tpu.dot_dimension_numbers<[1], [0], [0], [1], [0, 0, 1, 1], [], []>, precision = #tpu.contract_precision<fp32>} : vector<32x256xf32>, vector<256x256xf32>, vector<32x256xf32> -> vector<32x256xf32>
    %c0_4 = arith.constant 0 : index
    %c0_5 = arith.constant 0 : index
    %4 = vector.load %arg4[%c0_4, %c0_5] : memref<1x256xf32, #tpu.memory_space<vmem>>, vector<1x256xf32>
    %5 = vector.broadcast %4 : vector<1x256xf32> to vector<32x256xf32>
    %6 = arith.addf %3, %5 : vector<32x256xf32>
    %7 = vector.extract_strided_slice %6 {offsets = [0, 0], sizes = [32, 128], strides = [1, 1]} : vector<32x256xf32> to vector<32x128xf32>
    %c0_6 = arith.constant 0 : index
    %c0_7 = arith.constant 0 : index
    %c0_8 = arith.constant 0 : index
    %c0_9 = arith.constant 0 : index
    %8 = vector.load %arg5[%c0_6, %c0_7, %c0_8, %c0_9] : memref<1x2x32x128xf32, #tpu.memory_space<vmem>>, vector<1x1x32x128xf32>
    %9 = vector.shape_cast %8 : vector<1x1x32x128xf32> to vector<32x128xf32>
    %10 = vector.shape_cast %7 : vector<32x128xf32> to vector<1x1x32x128xf32>
    tpu.vector_store %arg5[%c0_6, %c0_7, %c0_8, %c0_9], %10 {strides = array<i32>} : memref<1x2x32x128xf32, #tpu.memory_space<vmem>>, vector<1x1x32x128xf32>,
    %11 = vector.extract_strided_slice %6 {offsets = [0, 128], sizes = [32, 128], strides = [1, 1]} : vector<32x256xf32> to vector<32x128xf32>
    %c0_10 = arith.constant 0 : index
    %c1 = arith.constant 1 : index
    %c0_11 = arith.constant 0 : index
    %c0_12 = arith.constant 0 : index
    %12 = vector.load %arg5[%c0_10, %c1, %c0_11, %c0_12] : memref<1x2x32x128xf32, #tpu.memory_space<vmem>>, vector<1x1x32x128xf32>
    %13 = vector.shape_cast %12 : vector<1x1x32x128xf32> to vector<32x128xf32>
    %14 = vector.shape_cast %11 : vector<32x128xf32> to vector<1x1x32x128xf32>
    tpu.vector_store %arg5[%c0_10, %c1, %c0_11, %c0_12], %14 {strides = array<i32>} : memref<1x2x32x128xf32, #tpu.memory_space<vmem>>, vector<1x1x32x128xf32>,
    return
  }
  func.func @transform_0(%arg0: i32, %arg1: i32) -> (i32, i32, i32) {
    %c1_i32 = arith.constant 1 : i32
    %0 = arith.addi %c1_i32, %arg1 : i32
    %c0_i32 = arith.constant 0 : i32
    %c0_i32_0 = arith.constant 0 : i32
    return %arg0, %0, %c0_i32 : i32, i32, i32
  }
  func.func @transform_1(%arg0: i32, %arg1: i32) -> (i32, i32) {
    %c0_i32 = arith.constant 0 : i32
    %c0_i32_0 = arith.constant 0 : i32
    %c0_i32_1 = arith.constant 0 : i32
    return %c0_i32, %c0_i32_0 : i32, i32
  }
  func.func @transform_2(%arg0: i32, %arg1: i32) -> (i32, i32) {
    %c0_i32 = arith.constant 0 : i32
    %c0_i32_0 = arith.constant 0 : i32
    %c0_i32_1 = arith.constant 0 : i32
    return %c0_i32, %c0_i32_0 : i32, i32
  }
  func.func @transform_3(%arg0: i32, %arg1: i32) -> (i32, i32, i32, i32) {
    %c0_i32 = arith.constant 0 : i32
    %c0_i32_0 = arith.constant 0 : i32
    %c0_i32_1 = arith.constant 0 : i32
    return %arg0, %c0_i32, %arg1, %c0_i32_0 : i32, i32, i32, i32
  }
}

</mosaic_0001>

<bundles_post_ra>
// kernel: tpu_custom_call.1
= control target key start
LH: loop header
LB: loop body
LE: loop exit
PB: predicated region body
PF: predicated region fallthrough
CT: control target
= control target key end

     0   :  { %s3945_s0 = inlined_call_operand.hbm [shape: f32[2,64,256], index: 0, kind: input, shape index: {}]   ;;  %s3946_s1 = inlined_call_operand.hbm [shape: f32[256,256], index: 1, kind: input, shape index: {}]   ;;  %s3947_s2 = inlined_call_operand.hbm [shape: f32[1,256], index: 2, kind: input, shape index: {}]   ;;  %s3948_s3 = inlined_call_operand.hbm [shape: f32[2,2,32,128], index: 3, kind: output, shape index: {}]  }
   0x1   :  { %4018 = sst [smem:[#allocation39_spill]] %s3946_s1 }
   0x2   :  { %8 = vsyncpa [#allocation3], 0 }
   0x3   :  { %10 = vsyncpa [#allocation3 + $0x1], 0 }
   0x4   :  { %11 = vsyncpa [#allocation6], 0 }
   0x5   :  { %12 = vsyncpa [#allocation4], 0 }
   0x6   :  { %14 = vsyncpa [#allocation4 + $0x1], 0  ;;  %s2511_s12 = smov 0   ;;  %s2513_s13 = smov 0  }
   0x7   :  { %s2515_s14 = smov 0   ;;  %s2517_s15 = smov 0  }
   0x8   :  { %s2519_s16 = smov 0   ;;  %s2521_s17 = smov 0  }
   0x9 LB: > { %s2195_s18 = sadd.s32 4294967295, %s2483_s17   ;;  %s2196_s19 = sadd.s32 4294967294, %s2483_s17   ;;  %s2483_s17 = sphi %s2521_s17, %s20_s17   ;;  %s2479_s16 = sphi %s2519_s16, %s4184_s16   ;;  %s2475_s15 = sphi %s2517_s15, %s4183_s15   ;;  %s2471_s14 = sphi %s2515_s14, %s4182_s14   ;;  %s2467_s13 = sphi %s2513_s13, %s4181_s13   ;;  %s2463_s12 = sphi %s2511_s12, %s4180_s12  }
   0xa   : > { %p56_p0 = scmp.ne.s32.totalorder %s2467_s13, %s2463_s12  ;;  %p2545_p1 = scmp.eq.s32.totalorder %s2195_s18, 0 }
   0xb   : > { %p2549_p2 = scmp.eq.s32.totalorder %s2195_s18, 1  ;;  %p130_p3 = scmp.eq.s32.totalorder %s2196_s19, 1 }
   0xc   : > { %p2555_p4 = por %p2545_p1, %p56_p0  ;;  %p2197_p5 = scmp.ge.s32.totalorder %s2483_s17, 1 }
   0xd   : > { %p2560_p6 = por %p130_p3, %p56_p0  ;;  %p137_p7 = scmp.lt.s32.totalorder %s2483_s17, 3 }
   0xe   : > { %s4023_s1 = sld [smem:[#allocation39_spill]]  ;;  %s2485_s28 = smov [#allocation5]  }
   0xf   : > { %p2568_p8 = pnand %p2197_p5, %p137_p7  ;;  %s150_s29 = sshll.u32 %s2485_s28, 4  ;;  %s151_s29 = int_to_ptr.vmem [resolvable:$true] %s150_s29 }
  0x10   : > { %p2200_p11 = scmp.ge.s32.totalorder %s2483_s17, 2  ;;  %s163_s5 = sshll.u32 %s3947_s2, 4  ;;  %s164_s5 = int_to_ptr.hbm [resolvable:$true] %s163_s5 }
  0x11   : > { %p2232_p9 = pneg %p2568_p8  ;;  %s3949_s6 = smov 256  }
  0x12   : > { %s3950_s7 = smov 16   ;;  %s2488_s8 = smov [#allocation7]  }
  0x13   : > { %p2233_p10 = pnand %p2232_p9, %p2545_p1  ;;  %s165_s9 = sshll.u32 %s2488_s8, 4  ;;  %s166_s9 = int_to_ptr.vmem [resolvable:$true] %s165_s9 }
  0x14   : > { %s148_s26 = sshll.u32 %s4023_s1, 4  ;;  %s32_s10 = sadd.s32 1, %s2479_s16  ;;  %s149_s26 = int_to_ptr.hbm [resolvable:$true] %s148_s26 }
  0x15   : > { %2235 = dma.hbm_to_vmem [thread:$0]  (!%p2233_p10), %s149_s26, 8192, %s151_s29, [#allocation6], %s3949_s6, %s3949_s6, %s3950_s7  }
  0x16   : > { %2238 = dma.hbm_to_vmem [thread:$0]  (!%p2233_p10), %s164_s5, 32, %s166_s9, [#allocation6]  }
  0x17   : > { %s43_s11 = sadd.s32 1, %s2471_s14  ;;  %p34_p12 = scmp.ge.s32.totalorder %s32_s10, 2 }
  0x18   : > { %p50_p13 = scmp.ne.s32.totalorder %s2471_s14, %s2467_s13  ;;  %p51_p0 = scmp.eq.s32.totalorder %s2483_s17, 0 }
  0x19   : > { %p2249_p3 = scmp.lt.s32.totalorder %s2483_s17, 2  ;;  %s4186_s10 = smov (%p34_p12, %s32_s10), 0 }
  0x1a   : > { %p2591_p5 = por %p51_p0, %p50_p13  ;;  %p2597_p7 = por %p2549_p2, %p50_p13 }
  0x1b   : > { %s38_s24 = ssub.s32 %s2479_s16, %s4186_s10  ;;  %s176_s25 = sand.u32 1, %s2471_s14  }
  0x1c   : > { %p41_p9 = scmp.eq.s32.totalorder %s38_s24, 0  ;;  %s2201_s26 = sshll.u32 %s176_s25, 6 }
  0x1d   : > { %s2218_s28 = sshll.u32 %s2479_s16, 7  ;;  %s180_s9 = scalar_lea.vmem [#allocation2], %s2201_s26 }
  0x1e   : > { %s2606_s29 = scalar_select %p41_p9, %s2471_s14, %s43_s11  }
  0x1f   : > { %s2123_s5 = scalar_lea.hbm %s3945_s0, %s2218_s28  ;;  %s192_s6 = sshll.u32 %s180_s9, 4  ;;  %s193_s6 = int_to_ptr.vmem [resolvable:$true] %s192_s6 }
  0x20   : > { %s2124_s8 = scalar_lea.hbm %s2123_s5, 64  ;;  %p2240_p2 = pnand %p2249_p3, %p2591_p5 }
  0x21   : > { %s190_s21 = sshll.u32 %s2124_s8, 4  ;;  %s177_s7 = scalar_lea.sflag [#allocation3], %s176_s25  ;;  %s191_s21 = int_to_ptr.hbm [resolvable:$true] %s190_s21 }
  0x22   : > { %s4027_s1 = smov 16   ;;  %s4028_s24 = smov 256  }
  0x23   : > { %2242 = dma.hbm_to_vmem [thread:$0]  (!%p2240_p2), %s191_s21, 1024, %s193_s6, %s177_s7, %s4028_s24, %s4028_s24, %s4027_s1  }
  0x24   : > { %204 = sbr.rel (%p2568_p8) target bundleno = 448 (0x1c0), region = 32 }
  0x29   : > { %s2621_s11 = sand.u32 1, %s2467_s13  }
  0x2a   : > { %s2205_s26 = sshll.u32 %s2621_s11, 6  ;;  %s207_s28 = scalar_lea.sflag [#allocation3], %s2621_s11 }
  0x2b   : > { %s2627_s18 = scalar_lea.vmem [#allocation2], %s2205_s26 }
  0x2c   : > { %2450 = dma.done.wait (%p2555_p4), %s207_s28, 1024  }
  0x2d   : > { %2452 = vsyncadd (%p2555_p4), %s207_s28, 4294966272 }
  0x2e   : > { %2454 = dma.done.wait (%p2545_p1), [#allocation6], 8224  }
  0x2f   : > { %2456 = vsyncadd (%p2545_p1), [#allocation6], 4294959072  ;;  %v285_v0 = vld [vmem:[#allocation5 + $0xf0] sm:$0xff]  ;;  %v283_v1 = vld [vmem:[#allocation5 + $0xe0] sm:$0xff]  ;;  %s3883_s1 = scalar_lea.vmem [#allocation8], %s2205_s26  ;;  %s2219_s20 = sshll.u32 %s2475_s15, 6 }
  0x30   : > { %v281_v2 = vld [vmem:[#allocation5 + $0xd0] sm:$0xff]  ;;  %v2637_v3 = vand.u32 4294901760, %v285_v0  ;;  %v2639_v4 = vand.u32 4294901760, %v283_v1  ;;  %v279_v6 = vld [vmem:[#allocation5 + $0xc0] sm:$0xff]  ;;  %s2084_s6 = scalar_lea.hbm %s3948_s3, %s2219_s20  ;;  %s2085_s7 = sshll.u32 %s3883_s1, 4  ;;  %s2086_s7 = int_to_ptr.vmem [resolvable:$true] %s2085_s7 }
  0x31   : > { %v2641_v5 = vand.u32 4294901760, %v281_v2  ;;  %v277_v7 = vld [vmem:[#allocation5 + $0xb0] sm:$0xff]  ;;  %v275_v8 = vld [vmem:[#allocation5 + $0xa0] sm:$0xff]  ;;  %v2643_v9 = vand.u32 4294901760, %v279_v6  ;;  %s2087_s25 = sshll.u32 %s2084_s6, 4  ;;  %s2071_s15 = scalar_lea.sflag [#allocation4], %s2621_s11  ;;  %s2088_s25 = int_to_ptr.hbm [resolvable:$true] %s2087_s25 }
  0x32   : > { %v2645_v10 = vand.u32 4294901760, %v277_v7  ;;  %v2647_v11 = vand.u32 4294901760, %v275_v8  ;;  %v273_v12 = vld [vmem:[#allocation5 + $0x90] sm:$0xff]  ;;  %v271_v13 = vld [vmem:[#allocation5 + $0x80] sm:$0xff]  ;;  %326 = vmatpush.msra.mxu0 %v2637_v3  ;;  %v2651_v14 = vsub.f32 %v285_v0, %v2637_v3  ;;  %v2654_v15 = vsub.f32 %v283_v1, %v2639_v4  ;;  %573 = vmatpush.msra.mxu3 %v2637_v3  ;;  %s2411_s30 = sshra.s32 %s2088_s25, 4  ;;  %s2417_s9 = scalar_lea.hbm %s3948_s3, 128  ;;  %s2412_s30 = int_to_ptr.hbm [resolvable:$true] %s2411_s30 }
  0x33   : > { %v2658_v16 = vsub.f32 %v281_v2, %v2641_v5  ;;  %v2660_v17 = vand.u32 4294901760, %v273_v12  ;;  %v269_v18 = vld [vmem:[#allocation5 + $0x70] sm:$0xff]  ;;  %v2663_v19 = vsub.f32 %v279_v6, %v2643_v9  ;;  %v2668_v21 = vand.u32 4294901760, %v271_v13  ;;  %v267_v29 = vld [vmem:[#allocation5 + $0x60] sm:$0xff]  ;;  %s2413_s4 = scalar_lea.hbm %s2412_s30, 64  ;;  %p2418_p10 = scmp.lt.s32.totalorder %s2412_s30, %s3948_s3 }
  0x34   : > { %v2666_v20 = vsub.f32 %v277_v7, %v2645_v10  ;;  %v2671_v22 = vsub.f32 %v275_v8, %v2647_v11  ;;  %328 = vmatpush.msra.mxu0 %v2639_v4  ;;  %505 = vmatpush.msra.mxu2 %v2651_v14  ;;  %v3965_v23 = vand.u32 4294901760, %v2651_v14  ;;  %v3964_v24 = vand.u32 4294901760, %v2654_v15  ;;  %v265_v36 = vld [vmem:[#allocation5 + $0x50] sm:$0xff]  ;;  %v263_v43 = vld [vmem:[#allocation5 + $0x40] sm:$0xff]  ;;  %p2414_p1 = scmp.ne.s32.totalorder %s2412_s30, %s2413_s4  ;;  %p2419_p12 = scmp.lt.s32.totalorder %s2417_s9, %s2413_s4 }
  0x35   : > { %v3963_v25 = vand.u32 4294901760, %v2658_v16  ;;  %575 = vmatpush.msra.mxu3 %v2639_v4  ;;  %v3961_v26 = vand.u32 4294901760, %v2663_v19  ;;  %v2680_v27 = vand.u32 4294901760, %v269_v18  ;;  %v2683_v28 = vsub.f32 %v273_v12, %v2660_v17  ;;  %v261_v49 = vld [vmem:[#allocation5 + $0x30] sm:$0xff]  ;;  %v259_v55 = vld [vmem:[#allocation5 + $0x20] sm:$0xff] }
  0x36   : > { %330 = vmatpush.msra.mxu0 %v2641_v5  ;;  %508 = vmatpush.msra.mxu2 %v2654_v15  ;;  %v393_v30 = vsub.f32 %v2651_v14, %v3965_v23  ;;  %v399_v31 = vsub.f32 %v2654_v15, %v3964_v24  ;;  %v3959_v33 = vand.u32 4294901760, %v2666_v20  ;;  %v3958_v34 = vand.u32 4294901760, %v2671_v22  ;;  %v247_v56 = vld [vmem:[%s2627_s18] sm:$0xff]  ;;  %v257_v62 = vld [vmem:[#allocation5 + $0x10] sm:$0xff]  ;;  %p2415_p4 = pnand %p2414_p1, %p2597_p7  ;;  %p2420_p13 = por %p2419_p12, %p2418_p10 }
  0x37   : > { %v405_v32 = vsub.f32 %v2658_v16, %v3963_v25  ;;  %577 = vmatpush.msra.mxu3 %v2641_v5  ;;  %v2700_v35 = vsub.f32 %v271_v13, %v2668_v21  ;;  %v411_v39 = vsub.f32 %v2663_v19, %v3961_v26  ;;  %v2707_v40 = vand.u32 4294901760, %v267_v29  ;;  %v317_v6 = vld [vmem:[#allocation5 + $0x1f0] sm:$0xff]  ;;  %v255_v12 = vld [vmem:[#allocation5] sm:$0xff] }
  0x38   : > { %332 = vmatpush.msra.mxu0 %v2643_v9  ;;  %v394_v37 = vand.u32 4294901760, %v393_v30  ;;  %511 = vmatpush.msra.mxu2 %v2658_v16  ;;  %v400_v38 = vand.u32 4294901760, %v399_v31  ;;  %v3957_v41 = vand.u32 4294901760, %v2683_v28  ;;  %v2712_v42 = vsub.f32 %v269_v18, %v2680_v27  ;;  %v305_v23 = vld [vmem:[#allocation5 + $0x190] sm:$0xff]  ;;  %p2416_p8 = pneg %p2415_p4 }
  0x39   : > { %579 = vmatpush.msra.mxu3 %v2643_v9  ;;  %v406_v44 = vand.u32 4294901760, %v405_v32  ;;  %v417_v45 = vsub.f32 %v2666_v20, %v3959_v33  ;;  %v2718_v46 = vand.u32 4294901760, %v265_v36  ;;  %v423_v47 = vsub.f32 %v2671_v22, %v3958_v34  ;;  %v251_v33 = vld [vmem:[%s2627_s18 + $0x20] sm:$0xff] }
  0x3a   : > { %334 = vmatpush.msra.mxu0 %v2645_v10  ;;  %395 = vmatpush.msra.mxu1 %v394_v37  ;;  %v3955_v48 = vand.u32 4294901760, %v2700_v35  ;;  %v412_v50 = vand.u32 4294901760, %v411_v39  ;;  %v2727_v51 = vand.u32 4294901760, %v263_v43  ;;  %v2730_v52 = vsub.f32 %v267_v29, %v2707_v40  ;;  %p2421_p0 = pnand %p2420_p13, %p2416_p8 }
  0x3b   : > { %514 = vmatpush.msra.mxu2 %v2663_v19  ;;  %581 = vmatpush.msra.mxu3 %v2645_v10  ;;  %v429_v53 = vsub.f32 %v2683_v28, %v3957_v41  ;;  %v3954_v54 = vand.u32 4294901760, %v2712_v42  ;;  %v418_v57 = vand.u32 4294901760, %v417_v45  ;;  %v2740_v58 = vand.u32 4294901760, %v261_v49 }
  0x3c   : > { %336 = vmatpush.msra.mxu0 %v2647_v11  ;;  %401 = vmatpush.msra.mxu1 %v400_v38  ;;  %v2743_v59 = vsub.f32 %v265_v36, %v2718_v46  ;;  %v424_v60 = vand.u32 4294901760, %v423_v47  ;;  %v435_v61 = vsub.f32 %v2700_v35, %v3955_v48  ;;  %v2751_v63 = vand.u32 4294901760, %v259_v55  ;;  %v249_v36 = vld [vmem:[%s2627_s18 + $0x10] sm:$0xff] }
  0x3d   : > { %517 = vmatpush.msra.mxu2 %v2666_v20  ;;  %583 = vmatpush.msra.mxu3 %v2647_v11  ;;  %v3953_v0 = vand.u32 4294901760, %v2730_v52  ;;  %v2755_v1 = vsub.f32 %v263_v43, %v2727_v51  ;;  %v2757_v2 = vand.u32 4294901760, %v247_v56  ;;  %v430_v7 = vand.u32 4294901760, %v429_v53 }
  0x3e   : > { %338 = vmatpush.msra.mxu0 %v2660_v17  ;;  %407 = vmatpush.msra.mxu1 %v406_v44  ;;  %4029 = vst [vmem:[#allocation12_spill] sm:$0xff] %v2751_v63  ;;  %v441_v8 = vsub.f32 %v2712_v42, %v3954_v54  ;;  %v2765_v13 = vand.u32 4294901760, %v257_v62  ;;  %v3951_v18 = vand.u32 4294901760, %v2743_v59  ;;  %v2769_v29 = vsub.f32 %v261_v49, %v2740_v58  ;;  %v315_v44 = vld [vmem:[#allocation5 + $0x1e0] sm:$0xff] }
  0x3f   : > { %520 = vmatpush.msra.mxu2 %v2671_v22  ;;  %585 = vmatpush.msra.mxu3 %v2660_v17  ;;  %v2772_v30 = vsub.f32 %v247_v56, %v2757_v2  ;;  %v436_v31 = vand.u32 4294901760, %v435_v61  ;;  %v2776_v32 = vand.u32 4294901760, %v317_v6  ;;  %v447_v37 = vsub.f32 %v2730_v52, %v3953_v0  ;;  %v313_v56 = vld [vmem:[#allocation5 + $0x1d0] sm:$0xff] }
  0x40   : > { %340 = vmatpush.msra.mxu0 %v2668_v21  ;;  %413 = vmatpush.msra.mxu1 %v412_v50  ;;  %4030 = vst [vmem:[#allocation13_spill] sm:$0xff] %v2765_v13  ;;  %v2783_v38 = vand.u32 4294901760, %v255_v12  ;;  %v3952_v39 = vand.u32 4294901760, %v2755_v1  ;;  %v2787_v43 = vsub.f32 %v259_v55, %v2751_v63  ;;  %v442_v45 = vand.u32 4294901760, %v441_v8 }
  0x41   : > { %523 = vmatpush.msra.mxu2 %v2683_v28  ;;  %587 = vmatpush.msra.mxu3 %v2668_v21  ;;  %4031 = vst [vmem:[#allocation14_spill] sm:$0xff] %v2772_v30  ;;  %v2792_v47 = vand.u32 4294901760, %v2772_v30  ;;  %v453_v49 = vsub.f32 %v2743_v59, %v3951_v18  ;;  %v3956_v50 = vand.u32 4294901760, %v2769_v29  ;;  %v2800_v53 = vsub.f32 %v257_v62, %v2765_v13 }
  0x42   : > { %342 = vmatpush.msra.mxu0 %v2680_v27  ;;  %419 = vmatpush.msra.mxu1 %v418_v57  ;;  %v2802_v55 = vand.u32 4294901760, %v249_v36  ;;  %v2806_v57 = vand.u32 4294901760, %v315_v44  ;;  %v448_v61 = vand.u32 4294901760, %v447_v37  ;;  %v459_v62 = vsub.f32 %v2755_v1, %v3952_v39 }
  0x43   : > { %526 = vmatpush.msra.mxu2 %v2700_v35  ;;  %589 = vmatpush.msra.mxu3 %v2680_v27  ;;  %4032 = vst [vmem:[#allocation15_spill] sm:$0xff] %v2792_v47  ;;  %v2817_v8 = vsub.f32 %v255_v12, %v2783_v38  ;;  %v2823_v18 = vand.u32 4294901760, %v313_v56  ;;  %v454_v37 = vand.u32 4294901760, %v453_v49  ;;  %v465_v39 = vsub.f32 %v2769_v29, %v3956_v50 }
  0x44   : > { %344 = vmatpush.msra.mxu0 %v2707_v40  ;;  %425 = vmatpush.msra.mxu1 %v424_v60  ;;  %4033 = vst [vmem:[#allocation16_spill] sm:$0xff] %v2806_v57  ;;  %v2809_v60 = vsub.f32 %v317_v6, %v2776_v32  ;;  %v360_v6 = vsub.f32 %v2772_v30, %v2792_v47  ;;  %v3962_v12 = vand.u32 4294901760, %v2800_v53  ;;  %v460_v49 = vand.u32 4294901760, %v459_v62 }
  0x45   : > { %529 = vmatpush.msra.mxu2 %v2712_v42  ;;  %591 = vmatpush.msra.mxu3 %v2707_v40  ;;  %v2831_v0 = vsub.f32 %v249_v36, %v2802_v55  ;;  %v2837_v48 = vsub.f32 %v315_v44, %v2806_v57  ;;  %v3967_v50 = vand.u32 4294901760, %v2817_v8  ;;  %v2851_v44 = vsub.f32 %v313_v56, %v2823_v18 }
  0x46   : > { %346 = vmatpush.msra.mxu0 %v2718_v46  ;;  %431 = vmatpush.msra.mxu1 %v430_v7  ;;  %v3960_v7 = vand.u32 4294901760, %v2787_v43  ;;  %v3966_v54 = vand.u32 4294901760, %v2809_v60  ;;  %v2847_v34 = vand.u32 4294901760, %v360_v6  ;;  %v477_v62 = vsub.f32 %v2800_v53, %v3962_v12  ;;  %v307_v6 = vld [vmem:[#allocation5 + $0x1a0] sm:$0xff] }
  0x47   : > { %532 = vmatpush.msra.mxu2 %v2730_v52  ;;  %593 = vmatpush.msra.mxu3 %v2718_v46  ;;  %4034 = vst [vmem:[#allocation17_spill] sm:$0xff] %v2831_v0  ;;  %v483_v12 = vsub.f32 %v2817_v8, %v3967_v50  ;;  %v2876_v24 = vand.u32 4294901760, %v251_v33 }
  0x48   : > { %348 = vmatpush.msra.mxu0 %v2727_v51  ;;  %437 = vmatpush.msra.mxu1 %v436_v31  ;;  %v311_v31 = vld [vmem:[#allocation5 + $0x1c0] sm:$0xff]  ;;  %v471_v36 = vsub.f32 %v2787_v43, %v3960_v7  ;;  %4036 = vst [vmem:[#allocation19_spill] sm:$0xff] %v2847_v34  ;;  %v2859_v7 = vand.u32 4294901760, %v2831_v0  ;;  %v827_v56 = vsub.f32 %v2809_v60, %v3966_v54  ;;  %v4039_v54 = vand.u32 4294901760, %v2837_v48 }
  0x49   : > { %535 = vmatpush.msra.mxu2 %v2743_v59  ;;  %595 = vmatpush.msra.mxu3 %v2727_v51  ;;  %v2844_v41 = vand.u32 4294901760, %v311_v31 }
  0x4a   : > { %350 = vmatpush.msra.mxu0 %v2740_v58  ;;  %443 = vmatpush.msra.mxu1 %v442_v45  ;;  %v309_v45 = vld [vmem:[#allocation5 + $0x1b0] sm:$0xff]  ;;  %4037 = vst [vmem:[#allocation20_spill] sm:$0xff] %v2859_v7 }
  0x4b   : > { %538 = vmatpush.msra.mxu2 %v2755_v1  ;;  %597 = vmatpush.msra.mxu3 %v2740_v58  ;;  %4035 = vst [vmem:[#allocation18_spill] sm:$0xff] %v2844_v41  ;;  %v2861_v26 = vand.u32 4294901760, %v309_v45  ;;  %v2874_v25 = vsub.f32 %v311_v31, %v2844_v41  ;;  %v368_v31 = vsub.f32 %v2831_v0, %v2859_v7 }
  0x4c   : > { %352 = vmatpush.msra.mxu0 %v2751_v63  ;;  %449 = vmatpush.msra.mxu1 %v448_v61  ;;  %v466_v61 = vand.u32 4294901760, %v465_v39  ;;  %v2881_v39 = vand.u32 4294901760, %v307_v6 }
  0x4d   : > { %541 = vmatpush.msra.mxu2 %v2769_v29  ;;  %599 = vmatpush.msra.mxu3 %v2751_v63  ;;  %v2888_v50 = vsub.f32 %v309_v45, %v2861_v26  ;;  %v2901_v63 = vsub.f32 %v251_v33, %v2876_v24  ;;  %v4043_v45 = vand.u32 4294901760, %v2658_v16  ;;  %v299_v16 = vld [vmem:[#allocation5 + $0x160] sm:$0xff] }
  0x4e   : > { %354 = vmatpush.msra.mxu0 %v2765_v13  ;;  %455 = vmatpush.msra.mxu1 %v454_v37  ;;  %v472_v37 = vand.u32 4294901760, %v471_v36  ;;  %v478_v36 = vand.u32 4294901760, %v477_v62  ;;  %v4040_v62 = vand.u32 4294901760, %v2654_v15  ;;  %v301_v15 = vld [vmem:[#allocation5 + $0x170] sm:$0xff] }
  0x4f   : > { %544 = vmatpush.msra.mxu2 %v2787_v43  ;;  %601 = vmatpush.msra.mxu3 %v2765_v13  ;;  %v833_v13 = vsub.f32 %v2837_v48, %v4039_v54  ;;  %v4041_v54 = vand.u32 4294901760, %v2851_v44  ;;  %v2928_v33 = vand.u32 4294901760, %v2901_v63 }
  0x50   : > { %356 = vmatpush.msra.mxu0 %v2783_v38  ;;  %461 = vmatpush.msra.mxu1 %v460_v49  ;;  %v4038_v49 = vand.u32 4294901760, %v2651_v14  ;;  %v303_v14 = vld [vmem:[#allocation5 + $0x180] sm:$0xff] }
  0x51   : > { %362 = vmatmul.f32.vlgmr.msra.gmra.mxu0 %v2847_v34  ;;  %547 = vmatpush.msra.mxu2 %v2800_v53  ;;  %v828_v34 = vand.u32 4294901760, %v827_v56  ;;  %v839_v56 = vsub.f32 %v2851_v44, %v4041_v54 }
  0x52   : > { %467 = vmatpush.msra.mxu1 %v466_v61  ;;  %632 = vmatpush.msrb.mxu0 %v4038_v49  ;;  %v2895_v61 = vand.u32 4294901760, %v305_v23  ;;  %v484_v49 = vand.u32 4294901760, %v483_v12  ;;  %v2912_v12 = vand.u32 4294901760, %v368_v31 }
  0x53   : > { %550 = vmatpush.msra.mxu2 %v2817_v8  ;;  %603 = vmatpush.msra.mxu3 %v2783_v38 }
  0x54   : > { %473 = vmatpush.msra.mxu1 %v472_v37  ;;  %636 = vmatpush.msrb.mxu0 %v4040_v62  ;;  %v2909_v37 = vsub.f32 %v307_v6, %v2881_v39  ;;  %4042 = vst [vmem:[#allocation21_spill] sm:$0xff] %v2912_v12  ;;  %v2915_v62 = vand.u32 4294901760, %v303_v14  ;;  %v2920_v54 = vsub.f32 %v305_v23, %v2895_v61  ;;  %v253_v6 = vld [vmem:[%s2627_s18 + $0x30] sm:$0xff]  ;;  %v840_v23 = vand.u32 4294901760, %v839_v56 }
  0x55   : > { %553 = vmatmul.f32.vlgmr.msra.gmra.mxu2 %v2772_v30  ;;  %607 = vmatmul.f32.vlgmr.msra.gmra.mxu3 %v2792_v47  ;;  %v834_v47 = vand.u32 4294901760, %v833_v13  ;;  %v2930_v30 = vand.u32 4294901760, %v301_v15  ;;  %v4047_v13 = vand.u32 4294901760, %v2666_v20  ;;  %v295_v20 = vld [vmem:[#allocation5 + $0x140] sm:$0xff] }
  0x56   : > { %760 = vmatpush.msrb.mxu2 %v2776_v32  ;;  %479 = vmatpush.msra.mxu1 %v478_v36  ;;  %v4044_v36 = vand.u32 4294901760, %v2874_v25 }
  0x57   : > { %640 = vmatpush.msrb.mxu0 %v4043_v45  ;;  %829 = vmatpush.msrb.mxu3 %v828_v34  ;;  %v4045_v34 = vand.u32 4294901760, %v2663_v19  ;;  %v297_v19 = vld [vmem:[#allocation5 + $0x150] sm:$0xff] }
  0x58   : > { %762 = vmatpush.msrb.mxu2 %v2806_v57  ;;  %485 = vmatpush.msra.mxu1 %v484_v49  ;;  %v845_v31 = vsub.f32 %v2874_v25, %v4044_v36  ;;  %v4046_v49 = vand.u32 4294901760, %v2888_v50  ;;  %v2942_v36 = vsub.f32 %v303_v14, %v2915_v62  ;;  %v2944_v57 = vand.u32 4294901760, %v253_v6 }
  0x59   : > { %644 = vmatpush.msrb.mxu0 %v4045_v34  ;;  %487 = vmatmul.f32.vlgmr.msra.gmra.mxu1 %v2757_v2  ;;  %v2948_v34 = vand.u32 4294901760, %v299_v16  ;;  %v376_v14 = vsub.f32 %v2901_v63, %v2928_v33 }
  0x5a   : > { %370 = vmatmul.f32.gmra.mxu0 %v2912_v12  ;;  %711 = vmatpush.msrb.mxu1 %v2637_v3  ;;  %v851_v45 = vsub.f32 %v2888_v50, %v4046_v49  ;;  %v846_v3 = vand.u32 4294901760, %v845_v31  ;;  %v2956_v49 = vsub.f32 %v301_v15, %v2930_v30  ;;  %v2962_v12 = vand.u32 4294901760, %v297_v19 }
  0x5b   : > { %764 = vmatpush.msrb.mxu2 %v2823_v18  ;;  %835 = vmatpush.msrb.mxu3 %v834_v47  ;;  %v4048_v47 = vand.u32 4294901760, %v2909_v37  ;;  %v2969_v15 = vsub.f32 %v253_v6, %v2944_v57  ;;  %v2984_v31 = vand.u32 4294901760, %v295_v20  ;;  %v4054_v6 = vand.u32 4294901760, %v2700_v35 }
  0x5c   : > { %648 = vmatpush.msrb.mxu0 %v4047_v13  ;;  %713 = vmatpush.msrb.mxu1 %v2639_v4  ;;  %v4049_v13 = vand.u32 4294901760, %v2671_v22  ;;  %v852_v4 = vand.u32 4294901760, %v851_v45  ;;  %v293_v22 = vld [vmem:[#allocation5 + $0x130] sm:$0xff]  ;;  %v4051_v45 = vand.u32 4294901760, %v2683_v28  ;;  %v4053_v28 = vand.u32 4294901760, %v2942_v36 }
  0x5d   : > { %766 = vmatpush.msrb.mxu2 %v2844_v41  ;;  %841 = vmatpush.msrb.mxu3 %v840_v23  ;;  %v857_v56 = vsub.f32 %v2909_v37, %v4048_v47  ;;  %v4050_v23 = vand.u32 4294901760, %v2920_v54  ;;  %v2977_v41 = vsub.f32 %v299_v16, %v2948_v34 }
  0x5e   : > { %652 = vmatpush.msrb.mxu0 %v4049_v13  ;;  %558 = vmatmul.f32.gmra.mxu2 %v2831_v0  ;;  %v2981_v13 = vand.u32 4294901760, %v376_v14  ;;  %v869_v16 = vsub.f32 %v2942_v36, %v4053_v28  ;;  %v2998_v14 = vand.u32 4294901760, %v293_v22  ;;  %v3010_v28 = vsub.f32 %v295_v20, %v2984_v31 }
  0x5f   : > { %715 = vmatpush.msrb.mxu1 %v2641_v5  ;;  %768 = vmatpush.msrb.mxu2 %v2861_v26  ;;  %v863_v47 = vsub.f32 %v2920_v54, %v4050_v23  ;;  %v858_v5 = vand.u32 4294901760, %v857_v56  ;;  %v2989_v23 = vsub.f32 %v297_v19, %v2962_v12  ;;  %v4055_v56 = vand.u32 4294901760, %v2956_v49  ;;  %v287_v19 = vld [vmem:[#allocation5 + $0x100] sm:$0xff] }
  0x60   : > { %847 = vmatpush.msrb.mxu3 %v846_v3  ;;  %656 = vmatpush.msrb.mxu0 %v4051_v45  ;;  %4052 = vst [vmem:[#allocation22_spill] sm:$0xff] %v2981_v13  ;;  %v2996_v3 = vand.u32 4294901760, %v2969_v15  ;;  %v291_v45 = vld [vmem:[#allocation5 + $0x120] sm:$0xff]  ;;  %v3022_v20 = vsub.f32 %v293_v22, %v2998_v14  ;;  %v892_v22 = vand.u32 4294901760, %v3010_v28  ;;  %v3043_v0 = vand.u32 4294901760, %v287_v19 }
  0x61   : > { %613 = vmatmul.f32.gmra.mxu3 %v2859_v7  ;;  %717 = vmatpush.msrb.mxu1 %v2643_v9  ;;  %v864_v9 = vand.u32 4294901760, %v863_v47  ;;  %v289_v7 = vld [vmem:[#allocation5 + $0x110] sm:$0xff]  ;;  %v3014_v47 = vand.u32 4294901760, %v291_v45 }
  0x62   : > { %770 = vmatpush.msrb.mxu2 %v2881_v39  ;;  %853 = vmatpush.msrb.mxu3 %v852_v4  ;;  %v875_v4 = vsub.f32 %v2956_v49, %v4055_v56  ;;  %v384_v56 = vsub.f32 %v2969_v15, %v2996_v3 }
  0x63   : > { %660 = vmatpush.msrb.mxu0 %v4054_v6  ;;  %491 = vmatmul.f32.gmra.mxu1 %v2802_v55  ;;  %v4056_v6 = vand.u32 4294901760, %v2712_v42  ;;  %v3029_v42 = vand.u32 4294901760, %v289_v7 }
  0x64   : > { %378 = vmatmul.f32.gmra.mxu0 %v2981_v13  ;;  %719 = vmatpush.msrb.mxu1 %v2645_v10  ;;  %v870_v10 = vand.u32 4294901760, %v869_v16  ;;  %v248_v13 = vld [vmem:[%s2627_s18 + $0x8] sm:$0xff]  ;;  %v876_v16 = vand.u32 4294901760, %v875_v4  ;;  %v4061_v4 = vand.u32 4294901760, %v2743_v59  ;;  %v893_v59 = vsub.f32 %v3010_v28, %v892_v22 }
  0x65   : > { %772 = vmatpush.msrb.mxu2 %v2895_v61  ;;  %859 = vmatpush.msrb.mxu3 %v858_v5  ;;  %v4057_v5 = vand.u32 4294901760, %v2977_v41 }
  0x66   : > { %664 = vmatpush.msrb.mxu0 %v4056_v6  ;;  %721 = vmatpush.msrb.mxu1 %v2647_v11  ;;  %v4058_v11 = vand.u32 4294901760, %v2730_v52  ;;  %v3045_v52 = vand.u32 4294901760, %v248_v13 }
  0x67   : > { %774 = vmatpush.msrb.mxu2 %v2915_v62  ;;  %865 = vmatpush.msrb.mxu3 %v864_v9  ;;  %v881_v35 = vsub.f32 %v2977_v41, %v4057_v5  ;;  %v4059_v9 = vand.u32 4294901760, %v2989_v23  ;;  %v3041_v5 = vsub.f32 %v291_v45, %v3014_v47  ;;  %v3055_v45 = vsub.f32 %v289_v7, %v3029_v42 }
  0x68   : > { %668 = vmatpush.msrb.mxu0 %v4058_v11  ;;  %563 = vmatmul.f32.gmra.mxu2 %v2901_v63  ;;  %4060 = vst [vmem:[#allocation23_spill] sm:$0xff] %v3045_v52  ;;  %v3049_v11 = vand.u32 4294901760, %v384_v56  ;;  %v3069_v7 = vsub.f32 %v287_v19, %v3043_v0  ;;  %v894_v19 = vand.u32 4294901760, %v893_v59 }
  0x69   : > { %723 = vmatpush.msrb.mxu1 %v2660_v17  ;;  %776 = vmatpush.msrb.mxu2 %v2930_v30  ;;  %v887_v6 = vsub.f32 %v2989_v23, %v4059_v9  ;;  %v898_v17 = vand.u32 4294901760, %v3022_v20  ;;  %v882_v9 = vand.u32 4294901760, %v881_v35  ;;  %v3066_v35 = vsub.f32 %v248_v13, %v3045_v52 }
  0x6a   : > { %871 = vmatpush.msrb.mxu3 %v870_v10  ;;  %672 = vmatpush.msrb.mxu0 %v4061_v4  ;;  %v4062_v10 = vand.u32 4294901760, %v2755_v1  ;;  %v4064_v13 = vand.u32 4294901760, %v2769_v29 }
  0x6b   : > { %619 = vmatmul.f32.gmra.mxu3 %v2928_v33  ;;  %725 = vmatpush.msrb.mxu1 %v2668_v21  ;;  %v888_v56 = vand.u32 4294901760, %v887_v6  ;;  %v904_v21 = vand.u32 4294901760, %v3041_v5  ;;  %4063 = vst [vmem:[#allocation24_spill] sm:$0xff] %v3066_v35  ;;  %v899_v1 = vsub.f32 %v3022_v20, %v898_v17  ;;  %v250_v6 = vld [vmem:[%s2627_s18 + $0x18] sm:$0xff]  ;;  %v3087_v4 = vand.u32 4294901760, %v3066_v35 }
  0x6c   : > { %778 = vmatpush.msrb.mxu2 %v2948_v34  ;;  %877 = vmatpush.msrb.mxu3 %v876_v16  ;;  %v910_v16 = vand.u32 4294901760, %v3055_v45 }
  0x6d   : > { %676 = vmatpush.msrb.mxu0 %v4062_v10  ;;  %495 = vmatmul.f32.gmra.mxu1 %v2876_v24  ;;  %4065 = vst [vmem:[#allocation25_spill] sm:$0xff] %v3087_v4  ;;  %v4066_v10 = vand.u32 4294901760, %v2787_v43  ;;  %v900_v29 = vand.u32 4294901760, %v899_v1  ;;  %v794_v1 = vsub.f32 %v3066_v35, %v3087_v4 }
  0x6e   : > { %386 = vmatmul.f32.gmra.mxu0 %v3049_v11  ;;  %727 = vmatpush.msrb.mxu1 %v2680_v27  ;;  %v905_v27 = vsub.f32 %v3041_v5, %v904_v21  ;;  %v911_v59 = vsub.f32 %v3055_v45, %v910_v16 }
  0x6f   : > { %780 = vmatpush.msrb.mxu2 %v2962_v12  ;;  %883 = vmatpush.msrb.mxu3 %v882_v9  ;;  %v916_v9 = vand.u32 4294901760, %v3069_v7 }
  0x70   : > { %680 = vmatpush.msrb.mxu0 %v4064_v13  ;;  %729 = vmatpush.msrb.mxu1 %v2707_v40  ;;  %v3093_v40 = vand.u32 4294901760, %v250_v6  ;;  %v906_v43 = vand.u32 4294901760, %v905_v27 }
  0x71   : > { %782 = vmatpush.msrb.mxu2 %v2984_v31  ;;  %889 = vmatpush.msrb.mxu3 %v888_v56  ;;  %v4068_v56 = vand.u32 4294901760, %v2800_v53  ;;  %v4070_v53 = vand.u32 4294901760, %v2817_v8 }
  0x72   : > { %684 = vmatpush.msrb.mxu0 %v4066_v10  ;;  %568 = vmatmul.f32.gmra.mxu2 %v2969_v15  ;;  %4067 = vst [vmem:[#allocation26_spill] sm:$0xff] %v3093_v40  ;;  %v3111_v13 = vsub.f32 %v250_v6, %v3093_v40  ;;  %v252_v10 = vld [vmem:[%s2627_s18 + $0x28] sm:$0xff] }
  0x73   : > { %731 = vmatpush.msrb.mxu1 %v2718_v46  ;;  %784 = vmatpush.msrb.mxu2 %v2998_v14  ;;  %v917_v46 = vsub.f32 %v3069_v7, %v916_v9  ;;  %v4072_v6 = vld [vmem:[#allocation12_spill] sm:$0xff] }
  0x74   : > { %895 = vmatpush.msrb.mxu3 %v894_v19  ;;  %688 = vmatpush.msrb.mxu0 %v4068_v56  ;;  %4069 = vst [vmem:[#allocation27_spill] sm:$0xff] %v3111_v13  ;;  %v3119_v19 = vand.u32 4294901760, %v794_v1  ;;  %v3125_v8 = vand.u32 4294901760, %v3111_v13 }
  0x75   : > { %625 = vmatmul.f32.gmra.mxu3 %v2996_v3  ;;  %733 = vmatpush.msrb.mxu1 %v2727_v51  ;;  %v912_v51 = vand.u32 4294901760, %v911_v59  ;;  %v918_v27 = vand.u32 4294901760, %v917_v46  ;;  %v4076_v59 = vand.u32 4294901760, %v2809_v60  ;;  %v254_v46 = vld [vmem:[%s2627_s18 + $0x38] sm:$0xff] }
  0x76   : > { %786 = vmatpush.msrb.mxu2 %v3014_v47  ;;  %901 = vmatpush.msrb.mxu3 %v900_v29  ;;  %4071 = vst [vmem:[#allocation28_spill] sm:$0xff] %v3119_v19  ;;  %v3130_v29 = vand.u32 4294901760, %v252_v10  ;;  %v802_v56 = vsub.f32 %v3111_v13, %v3125_v8 }
  0x77   : > { %692 = vmatpush.msrb.mxu0 %v4070_v53  ;;  %499 = vmatmul.f32.gmra.mxu1 %v2944_v57  ;;  %4073 = vst [vmem:[#allocation12_spill] sm:$0xff] %v3125_v8 }
  0x78   : > { %694 = vmatmul.f32.vlgmr.msrb.gmra.mxu0 %v2757_v2  ;;  %735 = vmatpush.msrb.mxu1 %v2740_v58  ;;  %v4074_v58 = vld [vmem:[#allocation13_spill] sm:$0xff]  ;;  %v3144_v1 = vsub.f32 %v252_v10, %v3130_v29  ;;  %v4087_v10 = vand.u32 4294901760, %v2909_v37 }
  0x79   : > { %788 = vmatpush.msrb.mxu2 %v3029_v42  ;;  %907 = vmatpush.msrb.mxu3 %v906_v43  ;;  %4075 = vst [vmem:[#allocation13_spill] sm:$0xff] %v3130_v29  ;;  %v4077_v43 = vand.u32 4294901760, %v2837_v48 }
  0x7a   : > { %939 = vmatpush.msra.mxu0 %v2809_v60  ;;  %737 = vmatpush.msrb.mxu1 %v4072_v6  ;;  %4078 = vst [vmem:[#allocation29_spill] sm:$0xff] %v3144_v1  ;;  %v3150_v60 = vand.u32 4294901760, %v802_v56  ;;  %v3159_v53 = vand.u32 4294901760, %v3144_v1  ;;  %v4090_v6 = vand.u32 4294901760, %v2920_v54  ;;  %v282_v56 = vld [vmem:[#allocation5 + $0xd8] sm:$0xff] }
  0x7b   : > { %790 = vmatpush.msrb.mxu2 %v3043_v0  ;;  %913 = vmatpush.msrb.mxu3 %v912_v51  ;;  %v4083_v51 = vand.u32 4294901760, %v2874_v25 }
  0x7c   : > { %942 = vmatpush.msra.mxu0 %v2837_v48  ;;  %739 = vmatpush.msrb.mxu1 %v4074_v58  ;;  %4079 = vst [vmem:[#allocation30_spill] sm:$0xff] %v3150_v60  ;;  %v4081_v48 = vld [vmem:[#allocation16_spill] sm:$0xff]  ;;  %v4092_v58 = vand.u32 4294901760, %v2942_v36 }
  0x7d   : > { %796 = vmatmul.f32.vlgmr.msrb.gmra.mxu2 %v3119_v19  ;;  %919 = vmatpush.msrb.mxu3 %v918_v27  ;;  %4082 = vst [vmem:[#allocation16_spill] sm:$0xff] %v3159_v53  ;;  %v4086_v27 = vld [vmem:[#allocation18_spill] sm:$0xff] }
  0x7e   : > { %1066 = vmatpush.msra.mxu2 %v4076_v59  ;;  %945 = vmatpush.msra.mxu0 %v2851_v44 }
  0x7f   : > { %741 = vmatpush.msrb.mxu1 %v2783_v38  ;;  %921 = vmatmul.f32.vlgmr.msrb.gmra.mxu3 %v3045_v52  ;;  %v4080_v38 = vand.u32 4294901760, %v2851_v44  ;;  %v4085_v44 = vand.u32 4294901760, %v2888_v50 }
  0x80   : > { %1070 = vmatpush.msra.mxu2 %v4077_v43  ;;  %1145 = vmatpush.msra.mxu3 %v2776_v32  ;;  %v278_v43 = vld [vmem:[#allocation5 + $0xb8] sm:$0xff] }
  0x81   : > { %948 = vmatpush.msra.mxu0 %v2874_v25  ;;  %743 = vmatmul.f32.vlgmr.msrb.gmra.mxu1 %v2757_v2  ;;  %v810_v25 = vsub.f32 %v3144_v1, %v3159_v53 }
  0x82   : > { %698 = vmatmul.f32.gmra.mxu0 %v2802_v55  ;;  %1007 = vmatpush.msra.mxu1 %v2776_v32  ;;  %v3166_v32 = vand.u32 4294901760, %v254_v46 }
  0x83   : > { %1074 = vmatpush.msra.mxu2 %v4080_v38  ;;  %1147 = vmatpush.msra.mxu3 %v4081_v48 }
  0x84   : > { %951 = vmatpush.msra.mxu0 %v2888_v50  ;;  %1009 = vmatpush.msra.mxu1 %v4081_v48  ;;  %4084 = vst [vmem:[#allocation31_spill] sm:$0xff] %v3166_v32  ;;  %v3187_v50 = vand.u32 4294901760, %v810_v25  ;;  %v274_v48 = vld [vmem:[#allocation5 + $0x98] sm:$0xff] }
  0x85   : > { %1078 = vmatpush.msra.mxu2 %v4083_v51  ;;  %1149 = vmatpush.msra.mxu3 %v2823_v18  ;;  %v270_v25 = vld [vmem:[#allocation5 + $0x78] sm:$0xff] }
  0x86   : > { %954 = vmatpush.msra.mxu0 %v2909_v37  ;;  %804 = vmatmul.f32.gmra.mxu2 %v3150_v60  ;;  %4089 = vst [vmem:[#allocation32_spill] sm:$0xff] %v3187_v50  ;;  %v308_v60 = vld [vmem:[#allocation5 + $0x1a8] sm:$0xff] }
  0x87   : > { %1011 = vmatpush.msra.mxu1 %v2823_v18  ;;  %1082 = vmatpush.msra.mxu2 %v4085_v44  ;;  %v3181_v18 = vsub.f32 %v254_v46, %v3166_v32  ;;  %v272_v46 = vld [vmem:[#allocation5 + $0x88] sm:$0xff] }
  0x88   : > { %1151 = vmatpush.msra.mxu3 %v4086_v27  ;;  %957 = vmatpush.msra.mxu0 %v2920_v54  ;;  %v286_v54 = vld [vmem:[#allocation5 + $0xf8] sm:$0xff] }
  0x89   : > { %925 = vmatmul.f32.gmra.mxu3 %v3093_v40  ;;  %1013 = vmatpush.msra.mxu1 %v4086_v27  ;;  %4088 = vst [vmem:[#allocation18_spill] sm:$0xff] %v3181_v18  ;;  %v3195_v37 = vand.u32 4294901760, %v3181_v18  ;;  %v3220_v59 = vand.u32 4294901760, %v286_v54  ;;  %v3305_v27 = vand.u32 4294901760, %v272_v46 }
  0x8a   : > { %1086 = vmatpush.msra.mxu2 %v4087_v10  ;;  %1153 = vmatpush.msra.mxu3 %v2861_v26 }
  0x8b   : > { %960 = vmatpush.msra.mxu0 %v2942_v36  ;;  %747 = vmatmul.f32.gmra.mxu1 %v2802_v55  ;;  %4091 = vst [vmem:[#allocation33_spill] sm:$0xff] %v3195_v37  ;;  %v4094_v36 = vand.u32 4294901760, %v2977_v41 }
  0x8c   : > { %702 = vmatmul.f32.gmra.mxu0 %v2876_v24  ;;  %1015 = vmatpush.msra.mxu1 %v2861_v26  ;;  %v4093_v26 = vand.u32 4294901760, %v2956_v49 }
  0x8d   : > { %1090 = vmatpush.msra.mxu2 %v4090_v6  ;;  %1155 = vmatpush.msra.mxu3 %v2881_v39 }
  0x8e   : > { %963 = vmatpush.msra.mxu0 %v2956_v49  ;;  %1017 = vmatpush.msra.mxu1 %v2881_v39  ;;  %v818_v39 = vsub.f32 %v3181_v18, %v3195_v37 }
  0x8f   : > { %1094 = vmatpush.msra.mxu2 %v4092_v58  ;;  %1157 = vmatpush.msra.mxu3 %v2895_v61 }
  0x90   : > { %966 = vmatpush.msra.mxu0 %v2977_v41  ;;  %812 = vmatmul.f32.gmra.mxu2 %v3187_v50  ;;  %v3218_v49 = vand.u32 4294901760, %v818_v39  ;;  %v3319_v39 = vand.u32 4294901760, %v270_v25 }
  0x91   : > { %1019 = vmatpush.msra.mxu1 %v2895_v61  ;;  %1098 = vmatpush.msra.mxu2 %v4093_v26  ;;  %v284_v61 = vld [vmem:[#allocation5 + $0xe8] sm:$0xff] }
  0x92   : > { %1159 = vmatpush.msra.mxu3 %v2915_v62  ;;  %969 = vmatpush.msra.mxu0 %v2989_v23  ;;  %4095 = vst [vmem:[#allocation34_spill] sm:$0xff] %v3218_v49  ;;  %v3227_v41 = vand.u32 4294901760, %v284_v61  ;;  %v268_v26 = vld [vmem:[#allocation5 + $0x68] sm:$0xff] }
  0x93   : > { %929 = vmatmul.f32.gmra.mxu3 %v3130_v29  ;;  %1021 = vmatpush.msra.mxu1 %v2915_v62  ;;  %v4096_v62 = vand.u32 4294901760, %v2989_v23  ;;  %v280_v23 = vld [vmem:[#allocation5 + $0xc8] sm:$0xff] }
  0x94   : > { %1102 = vmatpush.msra.mxu2 %v4094_v36  ;;  %1161 = vmatpush.msra.mxu3 %v2930_v30 }
  0x95   : > { %972 = vmatpush.msra.mxu0 %v3010_v28  ;;  %751 = vmatmul.f32.gmra.mxu1 %v2876_v24  ;;  %v3245_v28 = vsub.f32 %v284_v61, %v3227_v41  ;;  %v3325_v61 = vsub.f32 %v272_v46, %v3305_v27 }
  0x96   : > { %706 = vmatmul.f32.gmra.mxu0 %v2944_v57  ;;  %1023 = vmatpush.msra.mxu1 %v2930_v30  ;;  %v3235_v30 = vsub.f32 %v286_v54, %v3220_v59 }
  0x97   : > { %1106 = vmatpush.msra.mxu2 %v4096_v62  ;;  %1163 = vmatpush.msra.mxu3 %v2948_v34 }
  0x98   : > { %975 = vmatpush.msra.mxu0 %v3022_v20  ;;  %1025 = vmatpush.msra.mxu1 %v2948_v34  ;;  %v3240_v34 = vand.u32 4294901760, %v282_v56 }
  0x99   : > { %1110 = vmatpush.msra.mxu2 %v892_v22  ;;  %1165 = vmatpush.msra.mxu3 %v2962_v12  ;;  %v3249_v22 = vand.u32 4294901760, %v280_v23 }
  0x9a   : > { %978 = vmatpush.msra.mxu0 %v3041_v5  ;;  %820 = vmatmul.f32.gmra.mxu2 %v3218_v49  ;;  %v3258_v20 = vsub.f32 %v282_v56, %v3240_v34  ;;  %v3987_v5 = vand.u32 4294901760, %v3245_v28  ;;  %v3331_v56 = vand.u32 4294901760, %v268_v26 }
  0x9b   : > { %1027 = vmatpush.msra.mxu1 %v2962_v12  ;;  %1114 = vmatpush.msra.mxu2 %v898_v17  ;;  %v3989_v12 = vand.u32 4294901760, %v3235_v30  ;;  %v276_v17 = vld [vmem:[#allocation5 + $0xa8] sm:$0xff] }
  0x9c   : > { %1167 = vmatpush.msra.mxu3 %v2984_v31  ;;  %981 = vmatpush.msra.mxu0 %v3055_v45  ;;  %v3276_v38 = vand.u32 4294901760, %v276_v17  ;;  %v3985_v45 = vand.u32 4294901760, %v3258_v20 }
  0x9d   : > { %933 = vmatmul.f32.gmra.mxu3 %v3166_v32  ;;  %1029 = vmatpush.msra.mxu1 %v2984_v31  ;;  %v3262_v31 = vand.u32 4294901760, %v278_v43 }
  0x9e   : > { %1118 = vmatpush.msra.mxu2 %v904_v21  ;;  %1169 = vmatpush.msra.mxu3 %v2998_v14  ;;  %v3269_v21 = vsub.f32 %v280_v23, %v3249_v22  ;;  %v3298_v51 = vsub.f32 %v276_v17, %v3276_v38  ;;  %v1273_v44 = vsub.f32 %v3258_v20, %v3985_v45  ;;  %v266_v23 = vld [vmem:[#allocation5 + $0x58] sm:$0xff] }
  0x9f   : > { %984 = vmatpush.msra.mxu0 %v3069_v7  ;;  %755 = vmatmul.f32.gmra.mxu1 %v2944_v57  ;;  %v3292_v7 = vand.u32 4294901760, %v274_v48  ;;  %v3345_v46 = vand.u32 4294901760, %v266_v23 }
  0xa0   : > { %987 = vmatmul.f32.vlgmr.msra.gmra.mxu0 %v3066_v35  ;;  %1031 = vmatpush.msra.mxu1 %v2998_v14  ;;  %v1261_v14 = vsub.f32 %v3235_v30, %v3989_v12  ;;  %v3981_v54 = vand.u32 4294901760, %v3298_v51  ;;  %v1274_v36 = vand.u32 4294901760, %v1273_v44  ;;  %v256_v12 = vld [vmem:[#allocation5 + $0x8] sm:$0xff] }
  0xa1   : > { %1122 = vmatpush.msra.mxu2 %v910_v16  ;;  %1171 = vmatpush.msra.mxu3 %v3014_v47  ;;  %v3288_v16 = vsub.f32 %v278_v43, %v3262_v31  ;;  %v3316_v58 = vsub.f32 %v274_v48, %v3292_v7  ;;  %v3342_v48 = vsub.f32 %v270_v25, %v3319_v39 }
  0xa2   : > { %1194 = vmatpush.msrb.mxu0 %v3220_v59  ;;  %1033 = vmatpush.msra.mxu1 %v3014_v47  ;;  %v1267_v47 = vsub.f32 %v3245_v28, %v3987_v5 }
  0xa3   : > { %1126 = vmatpush.msra.mxu2 %v916_v9  ;;  %1173 = vmatpush.msra.mxu3 %v3029_v42  ;;  %v3984_v9 = vand.u32 4294901760, %v3269_v21  ;;  %v3983_v6 = vand.u32 4294901760, %v3288_v16  ;;  %v3982_v17 = vand.u32 4294901760, %v3316_v58 }
  0xa4   : > { %1196 = vmatpush.msrb.mxu0 %v3227_v41  ;;  %1035 = vmatpush.msra.mxu1 %v3029_v42  ;;  %v1262_v42 = vand.u32 4294901760, %v1261_v14  ;;  %v1268_v10 = vand.u32 4294901760, %v1267_v47  ;;  %v1291_v14 = vsub.f32 %v3298_v51, %v3981_v54  ;;  %v264_v47 = vld [vmem:[#allocation5 + $0x48] sm:$0xff] }
  0xa5   : > { %1128 = vmatmul.f32.vlgmr.msra.gmra.mxu2 %v3045_v52  ;;  %1175 = vmatpush.msra.mxu3 %v3043_v0  ;;  %v1285_v62 = vsub.f32 %v3288_v16, %v3983_v6  ;;  %v1297_v25 = vsub.f32 %v3316_v58, %v3982_v17  ;;  %v260_v17 = vld [vmem:[#allocation5 + $0x28] sm:$0xff] }
  0xa6   : > { %1373 = vmatpush.msrb.mxu2 %v3235_v30  ;;  %1198 = vmatpush.msrb.mxu0 %v3240_v34  ;;  %v1292_v54 = vand.u32 4294901760, %v1291_v14 }
  0xa7   : > { %1037 = vmatpush.msra.mxu1 %v3043_v0  ;;  %1177 = vmatmul.f32.vlgmr.msra.gmra.mxu3 %v3045_v52  ;;  %v1279_v0 = vsub.f32 %v3269_v21, %v3984_v9  ;;  %v1286_v44 = vand.u32 4294901760, %v1285_v62  ;;  %v3988_v62 = vand.u32 4294901760, %v3342_v48  ;;  %v1298_v9 = vand.u32 4294901760, %v1297_v25  ;;  %v318_v25 = vld [vmem:[#allocation5 + $0x1f8] sm:$0xff] }
  0xa8   : > { %1376 = vmatpush.msrb.mxu2 %v3245_v28  ;;  %1441 = vmatpush.msrb.mxu3 %v3220_v59 }
  0xa9   : > { %1200 = vmatpush.msrb.mxu0 %v3249_v22  ;;  %1041 = vmatmul.f32.vlgmr.msra.gmra.mxu1 %v3087_v4  ;;  %v1280_v43 = vand.u32 4294901760, %v1279_v0  ;;  %v3357_v0 = vand.u32 4294901760, %v264_v47  ;;  %v316_v4 = vld [vmem:[#allocation5 + $0x1e8] sm:$0xff] }
  0xaa   : > { %992 = vmatmul.f32.gmra.mxu0 %v3111_v13  ;;  %1263 = vmatpush.msrb.mxu1 %v1262_v42  ;;  %v3986_v42 = vand.u32 4294901760, %v3325_v61  ;;  %v314_v13 = vld [vmem:[#allocation5 + $0x1d8] sm:$0xff]  ;;  %v3431_v49 = vand.u32 4294901760, %v316_v4 }
  0xab   : > { %1379 = vmatpush.msrb.mxu2 %v3258_v20  ;;  %1443 = vmatpush.msrb.mxu3 %v3227_v41  ;;  %v3377_v45 = vsub.f32 %v264_v47, %v3357_v0 }
  0xac   : > { %1202 = vmatpush.msrb.mxu0 %v3262_v31  ;;  %1269 = vmatpush.msrb.mxu1 %v1268_v10  ;;  %v3351_v10 = vsub.f32 %v268_v26, %v3331_v56  ;;  %v1303_v26 = vsub.f32 %v3325_v61, %v3986_v42  ;;  %v258_v42 = vld [vmem:[#allocation5 + $0x18] sm:$0xff] }
  0xad   : > { %1382 = vmatpush.msrb.mxu2 %v3269_v21  ;;  %1445 = vmatpush.msrb.mxu3 %v3240_v34 }
  0xae   : > { %1204 = vmatpush.msrb.mxu0 %v3276_v38  ;;  %1132 = vmatmul.f32.gmra.mxu2 %v3093_v40  ;;  %v3992_v14 = vand.u32 4294901760, %v3351_v10  ;;  %v1304_v5 = vand.u32 4294901760, %v1303_v26 }
  0xaf   : > { %1275 = vmatpush.msrb.mxu1 %v1274_v36  ;;  %1385 = vmatpush.msrb.mxu2 %v3288_v16  ;;  %v262_v36 = vld [vmem:[#allocation5 + $0x38] sm:$0xff] }
  0xb0   : > { %1447 = vmatpush.msrb.mxu3 %v3249_v22  ;;  %1206 = vmatpush.msrb.mxu0 %v3292_v7  ;;  %v3371_v6 = vand.u32 4294901760, %v262_v36 }
  0xb1   : > { %1181 = vmatmul.f32.gmra.mxu3 %v3093_v40  ;;  %1281 = vmatpush.msrb.mxu1 %v1280_v43  ;;  %v3368_v43 = vsub.f32 %v266_v23, %v3345_v46  ;;  %v1309_v23 = vsub.f32 %v3342_v48, %v3988_v62  ;;  %v3396_v62 = vand.u32 4294901760, %v258_v42 }
  0xb2   : > { %1388 = vmatpush.msrb.mxu2 %v3298_v51  ;;  %1449 = vmatpush.msrb.mxu3 %v3262_v31  ;;  %4097 = vst [vmem:[#allocation35_spill] sm:$0xff] %v3371_v6  ;;  %v3394_v47 = vsub.f32 %v262_v36, %v3371_v6 }
  0xb3   : > { %1208 = vmatpush.msrb.mxu0 %v3305_v27  ;;  %1047 = vmatmul.f32.gmra.mxu1 %v3125_v8  ;;  %4099 = vst [vmem:[#allocation37_spill] sm:$0xff] %v3396_v62  ;;  %v4100_v36 = vand.u32 4294901760, %v3368_v43 }
  0xb4   : > { %997 = vmatmul.f32.gmra.mxu0 %v3144_v1  ;;  %1287 = vmatpush.msrb.mxu1 %v1286_v44  ;;  %v3383_v44 = vand.u32 4294901760, %v260_v17  ;;  %v1310_v1 = vand.u32 4294901760, %v1309_v23  ;;  %v3415_v23 = vsub.f32 %v258_v42, %v3396_v62 }
  0xb5   : > { %1391 = vmatpush.msrb.mxu2 %v3316_v58  ;;  %1451 = vmatpush.msrb.mxu3 %v3276_v38 }
  0xb6   : > { %1210 = vmatpush.msrb.mxu0 %v3319_v39  ;;  %1293 = vmatpush.msrb.mxu1 %v1292_v54  ;;  %4098 = vst [vmem:[#allocation36_spill] sm:$0xff] %v3383_v44  ;;  %v1315_v54 = vsub.f32 %v3351_v10, %v3992_v14  ;;  %v3403_v8 = vsub.f32 %v260_v17, %v3383_v44  ;;  %v3409_v14 = vand.u32 4294901760, %v256_v12  ;;  %v3417_v17 = vand.u32 4294901760, %v318_v25 }
  0xb7   : > { %1394 = vmatpush.msrb.mxu2 %v3325_v61  ;;  %1453 = vmatpush.msrb.mxu3 %v3292_v7  ;;  %v4105_v50 = vand.u32 4294901760, %v3415_v23 }
  0xb8   : > { %1212 = vmatpush.msrb.mxu0 %v3331_v56  ;;  %1136 = vmatmul.f32.gmra.mxu2 %v3130_v29  ;;  %v1316_v26 = vand.u32 4294901760, %v1315_v54  ;;  %4101 = vst [vmem:[#allocation38_spill] sm:$0xff] %v3417_v17  ;;  %v3429_v35 = vsub.f32 %v256_v12, %v3409_v14  ;;  %v3453_v54 = vsub.f32 %v316_v4, %v3431_v49 }
  0xb9   : > { %1299 = vmatpush.msrb.mxu1 %v1298_v9  ;;  %1397 = vmatpush.msrb.mxu2 %v3342_v48  ;;  %v1321_v9 = vsub.f32 %v3368_v43, %v4100_v36  ;;  %v1345_v40 = vsub.f32 %v3415_v23, %v4105_v50 }
  0xba   : > { %1455 = vmatpush.msrb.mxu3 %v3305_v27  ;;  %1214 = vmatpush.msrb.mxu0 %v3345_v46  ;;  %v4106_v50 = vand.u32 4294901760, %v3429_v35 }
  0xbb   : > { %1185 = vmatmul.f32.gmra.mxu3 %v3130_v29  ;;  %1305 = vmatpush.msrb.mxu1 %v1304_v5  ;;  %v4102_v5 = vand.u32 4294901760, %v3377_v45  ;;  %v1322_v42 = vand.u32 4294901760, %v1321_v9  ;;  %v3443_v9 = vand.u32 4294901760, %v314_v13 }
  0xbc   : > { %1400 = vmatpush.msrb.mxu2 %v3351_v10  ;;  %1457 = vmatpush.msrb.mxu3 %v3319_v39 }
  0xbd   : > { %1216 = vmatpush.msrb.mxu0 %v3357_v0  ;;  %1053 = vmatmul.f32.gmra.mxu1 %v3159_v53  ;;  %v1327_v36 = vsub.f32 %v3377_v45, %v4102_v5  ;;  %v4103_v5 = vand.u32 4294901760, %v3394_v47  ;;  %v312_v53 = vld [vmem:[#allocation5 + $0x1c8] sm:$0xff]  ;;  %v3465_v4 = vsub.f32 %v314_v13, %v3443_v9  ;;  %v4107_v13 = vld [vmem:[#allocation19_spill] sm:$0xff] }
  0xbe   : > { %1002 = vmatmul.f32.gmra.mxu0 %v3181_v18  ;;  %1311 = vmatpush.msrb.mxu1 %v1310_v1  ;;  %v3439_v18 = vsub.f32 %v318_v25, %v3417_v17 }
  0xbf   : > { %1403 = vmatpush.msrb.mxu2 %v3368_v43  ;;  %1459 = vmatpush.msrb.mxu3 %v3331_v56  ;;  %v1333_v1 = vsub.f32 %v3394_v47, %v4103_v5  ;;  %v1328_v12 = vand.u32 4294901760, %v1327_v36  ;;  %v310_v36 = vld [vmem:[#allocation5 + $0x1b8] sm:$0xff] }
  0xc0   : > { %1218 = vmatpush.msrb.mxu0 %v3371_v6  ;;  %1317 = vmatpush.msrb.mxu1 %v1316_v26  ;;  %v4104_v26 = vand.u32 4294901760, %v3403_v8  ;;  %v4108_v52 = vand.u32 4294901760, %v3439_v18 }
  0xc1   : > { %1406 = vmatpush.msrb.mxu2 %v3377_v45  ;;  %1461 = vmatpush.msrb.mxu3 %v3345_v46  ;;  %v1334_v29 = vand.u32 4294901760, %v1333_v1  ;;  %v3469_v1 = vand.u32 4294901760, %v310_v36 }
  0xc2   : > { %1220 = vmatpush.msrb.mxu0 %v3383_v44  ;;  %1140 = vmatmul.f32.gmra.mxu2 %v3166_v32  ;;  %v1339_v5 = vsub.f32 %v3403_v8, %v4104_v26  ;;  %v1351_v26 = vsub.f32 %v3429_v35, %v4106_v50  ;;  %v304_v50 = vld [vmem:[#allocation5 + $0x188] sm:$0xff] }
  0xc3   : > { %1323 = vmatpush.msrb.mxu1 %v1322_v42  ;;  %1409 = vmatpush.msrb.mxu2 %v3394_v47  ;;  %v3461_v42 = vand.u32 4294901760, %v312_v53 }
  0xc4   : > { %1463 = vmatpush.msrb.mxu3 %v3357_v0  ;;  %1222 = vmatpush.msrb.mxu0 %v3396_v62  ;;  %v1340_v25 = vand.u32 4294901760, %v1339_v5  ;;  %v1695_v5 = vsub.f32 %v3439_v18, %v4108_v52  ;;  %v1352_v52 = vand.u32 4294901760, %v1351_v26  ;;  %v4112_v26 = vand.u32 4294901760, %v3465_v4 }
  0xc5   : > { %1189 = vmatmul.f32.gmra.mxu3 %v3166_v32  ;;  %1329 = vmatpush.msrb.mxu1 %v1328_v12  ;;  %v4013_v12 = vand.u32 4294901760, %v3453_v54  ;;  %v1346_v32 = vand.u32 4294901760, %v1345_v40  ;;  %v3482_v19 = vsub.f32 %v312_v53, %v3461_v42  ;;  %v3492_v40 = vsub.f32 %v310_v36, %v3469_v1  ;;  %v4111_v36 = vld [vmem:[#allocation14_spill] sm:$0xff] }
  0xc6   : > { %1412 = vmatpush.msrb.mxu2 %v3403_v8  ;;  %1465 = vmatpush.msrb.mxu3 %v3371_v6  ;;  %v306_v6 = vld [vmem:[#allocation5 + $0x198] sm:$0xff] }
  0xc7   : > { %1224 = vmatpush.msrb.mxu0 %v3409_v14  ;;  %1059 = vmatmul.f32.gmra.mxu1 %v3195_v37  ;;  %v3487_v37 = vand.u32 4294901760, %v308_v60  ;;  %v3499_v53 = vand.u32 4294901760, %v306_v6 }
  0xc8   : > { %1230 = vmatmul.f32.vlgmr.msrb.gmra.mxu0 %v4107_v13  ;;  %1335 = vmatpush.msrb.mxu1 %v1334_v29  ;;  %v4109_v13 = vand.u32 4294901760, %v3235_v30  ;;  %v1701_v29 = vsub.f32 %v3453_v54, %v4013_v12  ;;  %v1696_v30 = vand.u32 4294901760, %v1695_v5 }
  0xc9   : > { %1415 = vmatpush.msrb.mxu2 %v3415_v23  ;;  %1467 = vmatpush.msrb.mxu3 %v3383_v44  ;;  %v4110_v44 = vand.u32 4294901760, %v3245_v28  ;;  %v3510_v12 = vsub.f32 %v308_v60, %v3487_v37  ;;  %v4113_v28 = vand.u32 4294901760, %v3258_v20  ;;  %v4116_v60 = vand.u32 4294901760, %v3482_v19 }
  0xca   : > { %1500 = vmatpush.msra.mxu0 %v4109_v13  ;;  %1341 = vmatpush.msrb.mxu1 %v1340_v25  ;;  %v1707_v13 = vsub.f32 %v3465_v4, %v4112_v26  ;;  %v1702_v25 = vand.u32 4294901760, %v1701_v29  ;;  %v3522_v26 = vsub.f32 %v306_v6, %v3499_v53  ;;  %v4118_v6 = vld [vmem:[#allocation21_spill] sm:$0xff] }
  0xcb   : > { %1418 = vmatpush.msrb.mxu2 %v3429_v35  ;;  %1469 = vmatpush.msrb.mxu3 %v3396_v62  ;;  %v302_v62 = vld [vmem:[#allocation5 + $0x178] sm:$0xff]  ;;  %v1713_v20 = vsub.f32 %v3482_v19, %v4116_v60  ;;  %v4017_v29 = vand.u32 4294901760, %v3510_v12 }
  0xcc   : > { %1504 = vmatpush.msra.mxu0 %v4110_v44  ;;  %1347 = vmatpush.msrb.mxu1 %v1346_v32  ;;  %v3516_v44 = vand.u32 4294901760, %v304_v50  ;;  %v300_v32 = vld [vmem:[#allocation5 + $0x168] sm:$0xff] }
  0xcd   : > { %1421 = vmatmul.f32.vlgmr.msrb.gmra.mxu2 %v4111_v36  ;;  %1471 = vmatpush.msrb.mxu3 %v3409_v14  ;;  %v4115_v36 = vld [vmem:[#allocation15_spill] sm:$0xff] }
  0xce   : > { %1628 = vmatpush.msra.mxu2 %v3417_v17  ;;  %1508 = vmatpush.msra.mxu0 %v4113_v28  ;;  %v3518_v5 = vpop.f32.mrf.mxu0  ;;  %v3528_v28 = vand.u32 4294901760, %v302_v62  ;;  %v4117_v17 = vand.u32 4294901760, %v3269_v21  ;;  %v3540_v60 = vsub.f32 %v304_v50, %v3516_v44  ;;  %v1725_v50 = vsub.f32 %v3510_v12, %v4017_v29 }
  0xcf   : > { %4114 = vst [vmem:[#allocation19_spill] sm:$0xff] %v3518_v5  ;;  %1353 = vmatpush.msrb.mxu1 %v1352_v52  ;;  %1475 = vmatmul.f32.vlgmr.msrb.gmra.mxu3 %v4115_v36  ;;  %v1708_v52 = vand.u32 4294901760, %v1707_v13  ;;  %v298_v5 = vld [vmem:[#allocation5 + $0x158] sm:$0xff]  ;;  %v4120_v13 = vand.u32 4294901760, %v3288_v16  ;;  %v4121_v21 = vand.u32 4294901760, %v3298_v51  ;;  %v4122_v16 = vld [vmem:[#allocation17_spill] sm:$0xff] }
  0xd0   : > { %1630 = vmatpush.msra.mxu2 %v3431_v49  ;;  %1697 = vmatpush.msra.mxu3 %v1696_v30  ;;  %v4119_v30 = vand.u32 4294901760, %v3492_v40  ;;  %v294_v51 = vld [vmem:[#allocation5 + $0x138] sm:$0xff] }
  0xd1   : > { %1512 = vmatpush.msra.mxu0 %v4117_v17  ;;  %1355 = vmatmul.f32.vlgmr.msrb.gmra.mxu1 %v2757_v2  ;;  %v3544_v17 = vand.u32 4294901760, %v300_v32 }
  0xd2   : > { %1238 = vmatmul.f32.gmra.mxu0 %v4118_v6  ;;  %1579 = vmatpush.msra.mxu1 %v3220_v59  ;;  %v1719_v36 = vsub.f32 %v3492_v40, %v4119_v30  ;;  %v1714_v59 = vand.u32 4294901760, %v1713_v20  ;;  %v3550_v6 = vsub.f32 %v302_v62, %v3528_v28  ;;  %v296_v30 = vld [vmem:[#allocation5 + $0x148] sm:$0xff] }
  0xd3   : > { %1632 = vmatpush.msra.mxu2 %v3443_v9  ;;  %1703 = vmatpush.msra.mxu3 %v1702_v25  ;;  %v3556_v25 = vand.u32 4294901760, %v298_v5  ;;  %v3570_v29 = vsub.f32 %v300_v32, %v3544_v17  ;;  %v3577_v20 = vand.u32 4294901760, %v296_v30 }
  0xd4   : > { %1516 = vmatpush.msra.mxu0 %v4120_v13  ;;  %1581 = vmatpush.msra.mxu1 %v3227_v41  ;;  %v1720_v41 = vand.u32 4294901760, %v1719_v36  ;;  %v4126_v36 = vand.u32 4294901760, %v3316_v58  ;;  %v4129_v58 = vand.u32 4294901760, %v3540_v60 }
  0xd5   : > { %1634 = vmatpush.msra.mxu2 %v3461_v42  ;;  %1709 = vmatpush.msra.mxu3 %v1708_v52  ;;  %v4124_v52 = vand.u32 4294901760, %v3522_v26  ;;  %v3584_v32 = vsub.f32 %v298_v5, %v3556_v25 }
  0xd6   : > { %1520 = vmatpush.msra.mxu0 %v4121_v21  ;;  %1426 = vmatmul.f32.gmra.mxu2 %v4122_v16  ;;  %v3562_v62 = vpop.f32.mrf.mxu1  ;;  %v292_v16 = vld [vmem:[#allocation5 + $0x128] sm:$0xff] }
  0xd7   : > { %4123 = vst [vmem:[#allocation14_spill] sm:$0xff] %v3562_v62  ;;  %1583 = vmatpush.msra.mxu1 %v3240_v34  ;;  %1636 = vmatpush.msra.mxu2 %v3469_v1  ;;  %v1731_v13 = vsub.f32 %v3522_v26, %v4124_v52  ;;  %v3572_v21 = vpop.f32.mrf.mxu0  ;;  %v4128_v62 = vld [vmem:[#allocation20_spill] sm:$0xff]  ;;  %v1726_v52 = vand.u32 4294901760, %v1725_v50  ;;  %v4134_v50 = vand.u32 4294901760, %v3342_v48 }
  0xd8   : > { %4125 = vst [vmem:[#allocation15_spill] sm:$0xff] %v3572_v21  ;;  %1715 = vmatpush.msra.mxu3 %v1714_v59  ;;  %1524 = vmatpush.msra.mxu0 %v4126_v36  ;;  %v3579_v34 = vpop.f32.mrf.mxu2  ;;  %v1737_v59 = vsub.f32 %v3540_v60, %v4129_v58  ;;  %v3590_v36 = vand.u32 4294901760, %v294_v51  ;;  %v4130_v21 = vand.u32 4294901760, %v3325_v61  ;;  %v3596_v5 = vpop.f32.mrf.mxu3  ;;  %v290_v61 = vld [vmem:[#allocation5 + $0x118] sm:$0xff] }
  0xd9   : > { %4127 = vst [vmem:[#allocation21_spill] sm:$0xff] %v3579_v34  ;;  %1481 = vmatmul.f32.gmra.mxu3 %v4128_v62  ;;  %1585 = vmatpush.msra.mxu1 %v3249_v22  ;;  %v1732_v22 = vand.u32 4294901760, %v1731_v13  ;;  %v4132_v62 = vld [vmem:[#allocation22_spill] sm:$0xff]  ;;  %v3604_v34 = vsub.f32 %v296_v30, %v3577_v20  ;;  %v4135_v30 = vand.u32 4294901760, %v3570_v29  ;;  %v3620_v13 = vand.u32 4294901760, %v290_v61 }
  0xda   : > { %1638 = vmatpush.msra.mxu2 %v3487_v37  ;;  %1721 = vmatpush.msra.mxu3 %v1720_v41  ;;  %4131 = vst [vmem:[#allocation17_spill] sm:$0xff] %v3596_v5  ;;  %v4133_v41 = vand.u32 4294901760, %v3550_v6  ;;  %v4136_v5 = vand.u32 4294901760, %v3351_v10 }
  0xdb   : > { %1528 = vmatpush.msra.mxu0 %v4130_v21  ;;  %1359 = vmatmul.f32.gmra.mxu1 %v2802_v55  ;;  %v3608_v21 = vand.u32 4294901760, %v292_v16  ;;  %v1760_v48 = vand.u32 4294901760, %v3604_v34 }
  0xdc   : > { %1246 = vmatmul.f32.gmra.mxu0 %v4132_v62  ;;  %1587 = vmatpush.msra.mxu1 %v3262_v31  ;;  %v1743_v58 = vsub.f32 %v3550_v6, %v4133_v41  ;;  %v1738_v31 = vand.u32 4294901760, %v1737_v59  ;;  %v3614_v62 = vsub.f32 %v294_v51, %v3590_v36  ;;  %v288_v41 = vld [vmem:[#allocation5 + $0x108] sm:$0xff]  ;;  %v4137_v59 = vand.u32 4294901760, %v3584_v32 }
  0xdd   : > { %1640 = vmatpush.msra.mxu2 %v3499_v53  ;;  %1727 = vmatpush.msra.mxu3 %v1726_v52  ;;  %v1749_v52 = vsub.f32 %v3570_v29, %v4135_v30  ;;  %v3636_v10 = vand.u32 4294901760, %v288_v41 }
  0xde   : > { %1532 = vmatpush.msra.mxu0 %v4134_v50  ;;  %1589 = vmatpush.msra.mxu1 %v3276_v38  ;;  %v1744_v38 = vand.u32 4294901760, %v1743_v58  ;;  %v3634_v50 = vsub.f32 %v292_v16, %v3608_v21  ;;  %v1766_v58 = vand.u32 4294901760, %v3614_v62  ;;  %v3648_v16 = vsub.f32 %v290_v61, %v3620_v13 }
  0xdf   : > { %1642 = vmatpush.msra.mxu2 %v3516_v44  ;;  %1733 = vmatpush.msra.mxu3 %v1732_v22  ;;  %v1755_v22 = vsub.f32 %v3584_v32, %v4137_v59  ;;  %v1750_v30 = vand.u32 4294901760, %v1749_v52 }
  0xe0   : > { %1536 = vmatpush.msra.mxu0 %v4136_v5  ;;  %1431 = vmatmul.f32.gmra.mxu2 %v2901_v63  ;;  %v3626_v51 = vpop.f32.mrf.mxu1  ;;  %v4138_v63 = vand.u32 4294901760, %v3368_v43  ;;  %v1761_v43 = vsub.f32 %v3604_v34, %v1760_v48  ;;  %v1767_v52 = vsub.f32 %v3614_v62, %v1766_v58 }
  0xe1   : > { %1591 = vmatpush.msra.mxu1 %v3292_v7  ;;  %1644 = vmatpush.msra.mxu2 %v3528_v28  ;;  %v3638_v5 = vpop.f32.mrf.mxu0  ;;  %v3643_v7 = vpop.f32.mrf.mxu2  ;;  %v1756_v59 = vand.u32 4294901760, %v1755_v22  ;;  %v4141_v22 = vand.u32 4294901760, %v3403_v8 }
  0xe2   : > { %1739 = vmatpush.msra.mxu3 %v1738_v31  ;;  %1540 = vmatpush.msra.mxu0 %v4138_v63  ;;  %v4139_v31 = vand.u32 4294901760, %v3377_v45  ;;  %v1778_v45 = vand.u32 4294901760, %v3648_v16  ;;  %v1768_v63 = vand.u32 4294901760, %v1767_v52  ;;  %v4145_v52 = vld [vmem:[#allocation36_spill] sm:$0xff] }
  0xe3   : > { %1487 = vmatmul.f32.gmra.mxu3 %v2928_v33  ;;  %1593 = vmatpush.msra.mxu1 %v3305_v27  ;;  %v1772_v33 = vand.u32 4294901760, %v3634_v50  ;;  %v3659_v27 = vsub.f32 %v288_v41, %v3636_v10  ;;  %v1762_v41 = vand.u32 4294901760, %v1761_v43  ;;  %v4142_v43 = vand.u32 4294901760, %v3415_v23 }
  0xe4   : > { %1646 = vmatpush.msra.mxu2 %v3544_v17  ;;  %1745 = vmatpush.msra.mxu3 %v1744_v38  ;;  %v3661_v61 = vpop.f32.mrf.mxu3  ;;  %v4140_v38 = vand.u32 4294901760, %v3394_v47 }
  0xe5   : > { %1544 = vmatpush.msra.mxu0 %v4139_v31  ;;  %1363 = vmatmul.f32.gmra.mxu1 %v2876_v24  ;;  %v4143_v31 = vand.u32 4294901760, %v3429_v35  ;;  %v4146_v35 = vld [vmem:[#allocation37_spill] sm:$0xff] }
  0xe6   : > { %1254 = vmatmul.f32.gmra.mxu0 %v3049_v11  ;;  %1595 = vmatpush.msra.mxu1 %v3319_v39  ;;  %v1773_v11 = vsub.f32 %v3634_v50, %v1772_v33  ;;  %v1784_v39 = vand.u32 4294901760, %v3659_v27 }
  0xe7   : > { %1648 = vmatpush.msra.mxu2 %v3556_v25  ;;  %1751 = vmatpush.msra.mxu3 %v1750_v30 }
  0xe8   : > { %1548 = vmatpush.msra.mxu0 %v4140_v38  ;;  %1597 = vmatpush.msra.mxu1 %v3331_v56  ;;  %v1779_v56 = vsub.f32 %v3648_v16, %v1778_v45 }
  0xe9   : > { %1650 = vmatpush.msra.mxu2 %v3577_v20  ;;  %1757 = vmatpush.msra.mxu3 %v1756_v59 }
  0xea   : > { %1552 = vmatpush.msra.mxu0 %v4141_v22  ;;  %1436 = vmatmul.f32.gmra.mxu2 %v2969_v15  ;;  %v3681_v47 = vpop.f32.mrf.mxu1  ;;  %v1774_v15 = vand.u32 4294901760, %v1773_v11  ;;  %v1780_v23 = vand.u32 4294901760, %v1779_v56  ;;  %v4148_v22 = vand.u32 4294901760, %v3439_v18  ;;  %v4149_v56 = vld [vmem:[#allocation23_spill] sm:$0xff] }
  0xeb   : > { %1599 = vmatpush.msra.mxu1 %v3345_v46  ;;  %1652 = vmatpush.msra.mxu2 %v3590_v36  ;;  %v3688_v30 = vpop.f32.mrf.mxu0  ;;  %v3692_v8 = vpop.f32.mrf.mxu2  ;;  %v1785_v46 = vsub.f32 %v3659_v27, %v1784_v39 }
  0xec   : > { %1763 = vmatpush.msra.mxu3 %v1762_v41  ;;  %1556 = vmatpush.msra.mxu0 %v4142_v43  ;;  %v4147_v41 = vld [vmem:[#allocation28_spill] sm:$0xff]  ;;  %v4150_v43 = vand.u32 4294901760, %v3453_v54 }
  0xed   : > { %1493 = vmatmul.f32.gmra.mxu3 %v2996_v3  ;;  %1601 = vmatpush.msra.mxu1 %v3357_v0  ;;  %v4144_v3 = vld [vmem:[#allocation35_spill] sm:$0xff]  ;;  %v1786_v0 = vand.u32 4294901760, %v1785_v46 }
  0xee   : > { %1654 = vmatpush.msra.mxu2 %v3608_v21  ;;  %1769 = vmatpush.msra.mxu3 %v1768_v63  ;;  %v3703_v59 = vpop.f32.mrf.mxu3 }
  0xef   : > { %1560 = vmatpush.msra.mxu0 %v4143_v31  ;;  %1367 = vmatmul.f32.gmra.mxu1 %v2944_v57 }
  0xf0   : > { %1562 = vmatmul.f32.vlgmr.msra.gmra.mxu0 %v2757_v2  ;;  %1603 = vmatpush.msra.mxu1 %v4144_v3  ;;  %v4158_v3 = vand.u32 4294901760, %v3522_v26 }
  0xf1   : > { %1656 = vmatpush.msra.mxu2 %v3620_v13  ;;  %1775 = vmatpush.msra.mxu3 %v1774_v15  ;;  %v4151_v15 = vld [vmem:[#allocation38_spill] sm:$0xff] }
  0xf2   : > { %1807 = vmatpush.msrb.mxu0 %v3439_v18  ;;  %1605 = vmatpush.msra.mxu1 %v4145_v52  ;;  %v4152_v18 = vand.u32 4294901760, %v3465_v4 }
  0xf3   : > { %1658 = vmatpush.msra.mxu2 %v3636_v10  ;;  %1781 = vmatpush.msra.mxu3 %v1780_v23  ;;  %v4157_v23 = vand.u32 4294901760, %v3510_v12 }
  0xf4   : > { %1810 = vmatpush.msrb.mxu0 %v3453_v54  ;;  %1607 = vmatpush.msra.mxu1 %v4146_v35  ;;  %v3713_v38 = vpop.f32.mrf.mxu1  ;;  %v4163_v35 = vld [vmem:[#allocation13_spill] sm:$0xff] }
  0xf5   : > { %1664 = vmatmul.f32.vlgmr.msra.gmra.mxu2 %v4147_v41  ;;  %1787 = vmatpush.msra.mxu3 %v1786_v0  ;;  %v3716_v11 = vpop.f32.mrf.mxu0  ;;  %v3721_v63 = vpop.f32.mrf.mxu2  ;;  %v4162_v0 = vld [vmem:[#allocation19_spill] sm:$0xff]  ;;  %v4165_v41 = vld [vmem:[#allocation14_spill] sm:$0xff] }
  0xf6   : > { %1934 = vmatpush.msrb.mxu2 %v4148_v22  ;;  %1813 = vmatpush.msrb.mxu0 %v3465_v4  ;;  %v4155_v4 = vand.u32 4294901760, %v3492_v40 }
  0xf7   : > { %1609 = vmatpush.msra.mxu1 %v3409_v14  ;;  %1789 = vmatmul.f32.vlgmr.msra.gmra.mxu3 %v4149_v56  ;;  %v4153_v14 = vand.u32 4294901760, %v3482_v19 }
  0xf8   : > { %1938 = vmatpush.msrb.mxu2 %v4150_v43  ;;  %2013 = vmatpush.msrb.mxu3 %v4151_v15  ;;  %v3730_v46 = vpop.f32.mrf.mxu3  ;;  %v4166_v43 = vand.u32 4294901760, %v3584_v32 }
  0xf9   : > { %1816 = vmatpush.msrb.mxu0 %v3482_v19  ;;  %1611 = vmatmul.f32.vlgmr.msra.gmra.mxu1 %v2757_v2  ;;  %v4154_v2 = vld [vmem:[#allocation30_spill] sm:$0xff] }
  0xfa   : > { %1566 = vmatmul.f32.gmra.mxu0 %v2802_v55  ;;  %1875 = vmatpush.msrb.mxu1 %v4151_v15  ;;  %v4170_v15 = vld [vmem:[#allocation31_spill] sm:$0xff] }
  0xfb   : > { %1942 = vmatpush.msrb.mxu2 %v4152_v18  ;;  %2015 = vmatpush.msrb.mxu3 %v3431_v49  ;;  %v4172_v18 = vld [vmem:[#allocation24_spill] sm:$0xff] }
  0xfc   : > { %1819 = vmatpush.msrb.mxu0 %v3492_v40  ;;  %1877 = vmatpush.msrb.mxu1 %v3431_v49  ;;  %v4156_v49 = vld [vmem:[#allocation26_spill] sm:$0xff]  ;;  %v3764_v40 = vld [vmem:[#allocation7] sm:$0x3] }
  0xfd   : > { %1946 = vmatpush.msrb.mxu2 %v4153_v14  ;;  %2017 = vmatpush.msrb.mxu3 %v3443_v9 }
  0xfe   : > { %1822 = vmatpush.msrb.mxu0 %v3510_v12  ;;  %1672 = vmatmul.f32.gmra.mxu2 %v4154_v2  ;;  %v3744_v54 = vpop.f32.mrf.mxu1 }
  0xff   : > { %1879 = vmatpush.msrb.mxu1 %v3443_v9  ;;  %1950 = vmatpush.msrb.mxu2 %v4155_v4  ;;  %v3749_v31 = vpop.f32.mrf.mxu0  ;;  %v4175_v4 = vld [vmem:[#allocation12_spill] sm:$0xff] }
 0x100   : > { %2019 = vmatpush.msrb.mxu3 %v3461_v42  ;;  %1825 = vmatpush.msrb.mxu0 %v3522_v26  ;;  %v3753_v19 = vpop.f32.mrf.mxu2  ;;  %v4161_v26 = vand.u32 4294901760, %v3550_v6 }
 0x101   : > { %1793 = vmatmul.f32.gmra.mxu3 %v4156_v49  ;;  %1881 = vmatpush.msrb.mxu1 %v3461_v42  ;;  %v3774_v42 = vperm.slane %v3764_v40, 0 }
 0x102   : > { %1954 = vmatpush.msrb.mxu2 %v4157_v23  ;;  %2021 = vmatpush.msrb.mxu3 %v3469_v1  ;;  %v3760_v9 = vpop.f32.mrf.mxu3 }
 0x103   : > { %1828 = vmatpush.msrb.mxu0 %v3540_v60  ;;  %1615 = vmatmul.f32.gmra.mxu1 %v2802_v55  ;;  %v4159_v55 = vand.u32 4294901760, %v3540_v60  ;;  %v364_v52 = vadd.f32 %v4162_v0, %v3774_v42  ;;  %v388_v23 = vadd.f32 %v3688_v30, %v3774_v42 }
 0x104   : > { %1570 = vmatmul.f32.gmra.mxu0 %v2876_v24  ;;  %1883 = vmatpush.msrb.mxu1 %v3469_v1  ;;  %v4160_v1 = vld [vmem:[#allocation32_spill] sm:$0xff] }
 0x105   : > { %1958 = vmatpush.msrb.mxu2 %v4158_v3  ;;  %2023 = vmatpush.msrb.mxu3 %v3487_v37  ;;  %v489_v22 = vadd.f32 %v4165_v41, %v364_v52 }
 0x106   : > { %1831 = vmatpush.msrb.mxu0 %v3550_v6  ;;  %1885 = vmatpush.msrb.mxu1 %v3487_v37 }
 0x107   : > { %1962 = vmatpush.msrb.mxu2 %v4159_v55  ;;  %2025 = vmatpush.msrb.mxu3 %v3499_v53 }
 0x108   : > { %1834 = vmatpush.msrb.mxu0 %v3570_v29  ;;  %1680 = vmatmul.f32.gmra.mxu2 %v4160_v1  ;;  %v3781_v12 = vpop.f32.mrf.mxu1 }
 0x109   : > { %1887 = vmatpush.msrb.mxu1 %v3499_v53  ;;  %1966 = vmatpush.msrb.mxu2 %v4161_v26  ;;  %v3786_v37 = vpop.f32.mrf.mxu0  ;;  %v3790_v60 = vpop.f32.mrf.mxu2  ;;  %v4164_v53 = vand.u32 4294901760, %v3570_v29 }
 0x10a   : > { %2027 = vmatpush.msrb.mxu3 %v3516_v44  ;;  %1837 = vmatpush.msrb.mxu0 %v3584_v32 }
 0x10b   : > { %1797 = vmatmul.f32.gmra.mxu3 %v4163_v35  ;;  %1889 = vmatpush.msrb.mxu1 %v3516_v44 }
 0x10c   : > { %1970 = vmatpush.msrb.mxu2 %v4164_v53  ;;  %2029 = vmatpush.msrb.mxu3 %v3528_v28  ;;  %v3799_v6 = vpop.f32.mrf.mxu3 }
 0x10d   : > { %1840 = vmatpush.msrb.mxu0 %v3604_v34  ;;  %1619 = vmatmul.f32.gmra.mxu1 %v2876_v24  ;;  %v4167_v24 = vld [vmem:[#allocation34_spill] sm:$0xff]  ;;  %v4169_v34 = vld [vmem:[#allocation15_spill] sm:$0xff] }
 0x10e   : > { %1574 = vmatmul.f32.gmra.mxu0 %v2944_v57  ;;  %1891 = vmatpush.msrb.mxu1 %v3528_v28  ;;  %v4168_v28 = vld [vmem:[#allocation21_spill] sm:$0xff] }
 0x10f   : > { %1974 = vmatpush.msrb.mxu2 %v4166_v43  ;;  %2031 = vmatpush.msrb.mxu3 %v3544_v17  ;;  %v555_v29 = vadd.f32 %v4168_v28, %v489_v22 }
 0x110   : > { %1843 = vmatpush.msrb.mxu0 %v3614_v62  ;;  %1893 = vmatpush.msrb.mxu1 %v3544_v17  ;;  %v4171_v62 = vld [vmem:[#allocation17_spill] sm:$0xff] }
 0x111   : > { %1978 = vmatpush.msrb.mxu2 %v1760_v48  ;;  %2033 = vmatpush.msrb.mxu3 %v3556_v25  ;;  %v372_v48 = vadd.f32 %v4169_v34, %v3774_v42 }
 0x112   : > { %1846 = vmatpush.msrb.mxu0 %v3634_v50  ;;  %1688 = vmatmul.f32.gmra.mxu2 %v4167_v24  ;;  %v3816_v44 = vpop.f32.mrf.mxu1 }
 0x113   : > { %1895 = vmatpush.msrb.mxu1 %v3556_v25  ;;  %1982 = vmatpush.msrb.mxu2 %v1766_v58  ;;  %v3822_v32 = vpop.f32.mrf.mxu0  ;;  %v3826_v17 = vpop.f32.mrf.mxu2  ;;  %v609_v58 = vadd.f32 %v4171_v62, %v555_v29  ;;  %v493_v14 = vadd.f32 %v3626_v51, %v372_v48 }
 0x114   : > { %2035 = vmatpush.msrb.mxu3 %v3577_v20  ;;  %1849 = vmatpush.msrb.mxu0 %v3648_v16  ;;  %v380_v16 = vadd.f32 %v3638_v5, %v3774_v42  ;;  %v4177_v42 = vld [vmem:[#allocation16_spill] sm:$0xff] }
 0x115   : > { %1801 = vmatmul.f32.gmra.mxu3 %v4170_v15  ;;  %1897 = vmatpush.msrb.mxu1 %v3577_v20  ;;  %v696_v20 = vadd.f32 %v3716_v11, %v609_v58  ;;  %v560_v51 = vadd.f32 %v3643_v7, %v493_v14 }
 0x116   : > { %1986 = vmatpush.msrb.mxu2 %v1772_v33  ;;  %2037 = vmatpush.msrb.mxu3 %v3590_v36  ;;  %v3835_v25 = vpop.f32.mrf.mxu3 }
 0x117   : > { %1852 = vmatpush.msrb.mxu0 %v3659_v27  ;;  %1623 = vmatmul.f32.gmra.mxu1 %v2944_v57  ;;  %v745_v57 = vadd.f32 %v3744_v54, %v696_v20  ;;  %v4173_v27 = vld [vmem:[#allocation25_spill] sm:$0xff]  ;;  %v615_v7 = vadd.f32 %v3661_v61, %v560_v51 }
 0x118   : > { %1855 = vmatmul.f32.vlgmr.msrb.gmra.mxu0 %v4172_v18  ;;  %1899 = vmatpush.msrb.mxu1 %v3590_v36 }
 0x119   : > { %1990 = vmatpush.msrb.mxu2 %v1778_v45  ;;  %2039 = vmatpush.msrb.mxu3 %v3608_v21  ;;  %v798_v33 = vadd.f32 %v3753_v19, %v745_v57  ;;  %v700_v11 = vadd.f32 %v3749_v31, %v615_v7 }
 0x11a   : > { %1901 = vmatpush.msrb.mxu1 %v3608_v21 }
 0x11b   : > { %1994 = vmatpush.msrb.mxu2 %v1784_v39  ;;  %2041 = vmatpush.msrb.mxu3 %v3620_v13  ;;  %v497_v39 = vadd.f32 %v3681_v47, %v380_v16  ;;  %v4176_v47 = vld [vmem:[#allocation29_spill] sm:$0xff] }
 0x11c   : > { %1903 = vmatpush.msrb.mxu1 %v3620_v13  ;;  %1996 = vmatmul.f32.vlgmr.msrb.gmra.mxu2 %v4149_v56  ;;  %v756_v36 = vpop.f32.mrf.mxu1  ;;  %v4174_v13 = vld [vmem:[#allocation27_spill] sm:$0xff] }
 0x11d   : > { %2043 = vmatpush.msrb.mxu3 %v3636_v10  ;;  %v988_v50 = vpop.f32.mrf.mxu0  ;;  %v821_v21 = vpop.f32.mrf.mxu2  ;;  %v565_v54 = vadd.f32 %v3692_v8, %v497_v39  ;;  %v501_v8 = vadd.f32 %v3713_v38, %v388_v23 }
 0x11e   : > { %1905 = vmatpush.msrb.mxu1 %v3636_v10  ;;  %2045 = vmatmul.f32.vlgmr.msrb.gmra.mxu3 %v4149_v56  ;;  %v923_v10 = vadd.f32 %v3760_v9, %v798_v33  ;;  %v749_v56 = vadd.f32 %v3781_v12, %v700_v11 }
 0x11f   : > { %1909 = vmatmul.f32.vlgmr.msrb.gmra.mxu1 %v4173_v27 }
 0x120   : > { %1860 = vmatmul.f32.gmra.mxu0 %v4174_v13  ;;  %v934_v45 = vpop.f32.mrf.mxu3  ;;  %v989_v5 = vadd.f32 %v988_v50, %v923_v10  ;;  %v806_v9 = vadd.f32 %v3790_v60, %v749_v56  ;;  %v4178_v60 = vld [vmem:[#allocation18_spill] sm:$0xff] }
 0x122   : > { %v927_v26 = vadd.f32 %v3799_v6, %v806_v9 }
 0x124   : > { %2000 = vmatmul.f32.gmra.mxu2 %v4156_v49 }
 0x126   : > { %2049 = vmatmul.f32.gmra.mxu3 %v4156_v49  ;;  %v1042_v2 = vpop.f32.mrf.mxu1  ;;  %v621_v49 = vadd.f32 %v3703_v59, %v565_v54 }
 0x127   : > { %1915 = vmatmul.f32.gmra.mxu1 %v4175_v4  ;;  %v993_v61 = vpop.f32.mrf.mxu0  ;;  %v1043_v19 = vadd.f32 %v1042_v2, %v989_v5 }
 0x128   : > { %1865 = vmatmul.f32.gmra.mxu0 %v4176_v47  ;;  %v1129_v31 = vpop.f32.mrf.mxu2  ;;  %v704_v12 = vadd.f32 %v3786_v37, %v621_v49  ;;  %v994_v59 = vadd.f32 %v993_v61, %v927_v26  ;;  %v570_v37 = vadd.f32 %v3721_v63, %v501_v8  ;;  %v4179_v63 = vld [vmem:[#allocation33_spill] sm:$0xff] }
 0x129   : > { %v1130_v3 = vadd.f32 %v1129_v31, %v1043_v19 }
 0x12a   : > { %v1178_v55 = vpop.f32.mrf.mxu3  ;;  %v753_v30 = vadd.f32 %v3816_v44, %v704_v12  ;;  %v627_v22 = vadd.f32 %v3730_v46, %v570_v37 }
 0x12b   : > { %v1179_v1 = vadd.f32 %v1178_v55, %v1130_v3  ;;  %v322_v3 = vperm.slane %v3764_v40, 1 }
 0x12c   : > { %2004 = vmatmul.f32.gmra.mxu2 %v4163_v35  ;;  %v814_v6 = vadd.f32 %v3826_v17, %v753_v30  ;;  %v708_v24 = vadd.f32 %v3822_v32, %v627_v22 }
 0x12d   : > { %2061 = vst [vmem:[%s3883_s1] sm:$0xff] %v1179_v1 }
 0x12e   : > { %2053 = vmatmul.f32.gmra.mxu3 %v4163_v35  ;;  %v931_v44 = vadd.f32 %v3835_v25, %v814_v6  ;;  %v757_v28 = vadd.f32 %v756_v36, %v708_v24 }
 0x12f   : > { %1921 = vmatmul.f32.gmra.mxu1 %v4177_v42 }
 0x130   : > { %1870 = vmatmul.f32.gmra.mxu0 %v4178_v60  ;;  %v1048_v38 = vpop.f32.mrf.mxu1  ;;  %v822_v58 = vadd.f32 %v821_v21, %v757_v28 }
 0x131   : > { %v998_v0 = vpop.f32.mrf.mxu0  ;;  %v1049_v52 = vadd.f32 %v1048_v38, %v994_v59  ;;  %v1133_v53 = vpop.f32.mrf.mxu2 }
 0x132   : > { %v999_v29 = vadd.f32 %v998_v0, %v931_v44 }
 0x133   : > { %v1134_v41 = vadd.f32 %v1133_v53, %v1049_v52 }
 0x134   : > { %2008 = vmatmul.f32.gmra.mxu2 %v4170_v15  ;;  %v1182_v35 = vpop.f32.mrf.mxu3 }
 0x135   : > { %v1183_v43 = vadd.f32 %v1182_v35, %v1134_v41 }
 0x136   : > { %2057 = vmatmul.f32.gmra.mxu3 %v4170_v15  ;;  %v935_v15 = vadd.f32 %v934_v45, %v822_v58 }
 0x137   : > { %1927 = vmatmul.f32.gmra.mxu1 %v4179_v63  ;;  %2062 = vst [vmem:[%s3883_s1 + $0x8] sm:$0xff] %v1183_v43 }
 0x13a   : > { %v1054_v17 = vpop.f32.mrf.mxu1 }
 0x13b   : > { %v1003_v34 = vpop.f32.mrf.mxu0  ;;  %v1055_v48 = vadd.f32 %v1054_v17, %v999_v29  ;;  %v1137_v62 = vpop.f32.mrf.mxu2 }
 0x13c   : > { %v1004_v20 = vadd.f32 %v1003_v34, %v935_v15 }
 0x13d   : > { %v1138_v46 = vadd.f32 %v1137_v62, %v1055_v48 }
 0x13e   : > { %v1186_v18 = vpop.f32.mrf.mxu3 }
 0x13f   : > { %v1187_v14 = vadd.f32 %v1186_v18, %v1138_v46 }
 0x141   : > { %2063 = vst [vmem:[%s3883_s1 + $0x10] sm:$0xff] %v1187_v14 }
 0x144   : > { %v1060_v32 = vpop.f32.mrf.mxu1 }
 0x145   : > { %v1061_v57 = vadd.f32 %v1060_v32, %v1004_v20  ;;  %v1231_v25 = vpop.f32.mrf.mxu0  ;;  %v1141_v51 = vpop.f32.mrf.mxu2 }
 0x146   : > { %v1232_v49 = vadd.f32 %v1231_v25, %v322_v3 }
 0x147   : > { %v1142_v50 = vadd.f32 %v1141_v51, %v1061_v57 }
 0x148   : > { %v1190_v16 = vpop.f32.mrf.mxu3 }
 0x149   : > { %v1191_v36 = vadd.f32 %v1190_v16, %v1142_v50 }
 0x14b   : > { %2064 = vst [vmem:[%s3883_s1 + $0x18] sm:$0xff] %v1191_v36 }
 0x14e   : > { %v1356_v33 = vpop.f32.mrf.mxu1 }
 0x14f   : > { %v1239_v27 = vpop.f32.mrf.mxu0  ;;  %v1357_v26 = vadd.f32 %v1356_v33, %v1232_v49 }
 0x150   : > { %v1422_v13 = vpop.f32.mrf.mxu2  ;;  %v1240_v30 = vadd.f32 %v1239_v27, %v322_v3 }
 0x151   : > { %v1423_v42 = vadd.f32 %v1422_v13, %v1357_v26 }
 0x152   : > { %v1476_v7 = vpop.f32.mrf.mxu3 }
 0x153   : > { %v1477_v37 = vadd.f32 %v1476_v7, %v1423_v42 }
 0x158   : > { %v1360_v39 = vpop.f32.mrf.mxu1 }
 0x159   : > { %v1247_v21 = vpop.f32.mrf.mxu0  ;;  %v1427_v11 = vpop.f32.mrf.mxu2  ;;  %v1361_v0 = vadd.f32 %v1360_v39, %v1240_v30 }
 0x15a   : > { %v1248_v6 = vadd.f32 %v1247_v21, %v322_v3 }
 0x15b   : > { %v1428_v41 = vadd.f32 %v1427_v11, %v1361_v0 }
 0x15c   : > { %v1482_v10 = vpop.f32.mrf.mxu3 }
 0x15d   : > { %v1483_v40 = vadd.f32 %v1482_v10, %v1428_v41 }
 0x162   : > { %v1364_v56 = vpop.f32.mrf.mxu1 }
 0x163   : > { %v1255_v45 = vpop.f32.mrf.mxu0  ;;  %v1432_v5 = vpop.f32.mrf.mxu2  ;;  %v1365_v43 = vadd.f32 %v1364_v56, %v1248_v6 }
 0x164   : > { %v1256_v17 = vadd.f32 %v1255_v45, %v322_v3 }
 0x165   : > { %v1433_v34 = vadd.f32 %v1432_v5, %v1365_v43 }
 0x166   : > { %v1488_v2 = vpop.f32.mrf.mxu3 }
 0x167   : > { %v1489_v18 = vadd.f32 %v1488_v2, %v1433_v34 }
 0x16c   : > { %v1368_v54 = vpop.f32.mrf.mxu1 }
 0x16d   : > { %v1563_v4 = vpop.f32.mrf.mxu0  ;;  %v1437_v61 = vpop.f32.mrf.mxu2  ;;  %v1369_v14 = vadd.f32 %v1368_v54, %v1256_v17 }
 0x16e   : > { %v1564_v53 = vadd.f32 %v1563_v4, %v1477_v37 }
 0x16f   : > { %v1438_v50 = vadd.f32 %v1437_v61, %v1369_v14 }
 0x170   : > { %v1494_v19 = vpop.f32.mrf.mxu3 }
 0x171   : > { %v1495_v39 = vadd.f32 %v1494_v19, %v1438_v50 }
 0x176   : > { %v1612_v47 = vpop.f32.mrf.mxu1 }
 0x177   : > { %v1567_v31 = vpop.f32.mrf.mxu0  ;;  %v1613_v35 = vadd.f32 %v1612_v47, %v1564_v53 }
 0x178   : > { %v1665_v23 = vpop.f32.mrf.mxu2  ;;  %v1568_v28 = vadd.f32 %v1567_v31, %v1483_v40 }
 0x179   : > { %v1666_v24 = vadd.f32 %v1665_v23, %v1613_v35 }
 0x17a   : > { %v1790_v9 = vpop.f32.mrf.mxu3 }
 0x17b   : > { %v1791_v48 = vadd.f32 %v1790_v9, %v1666_v24 }
 0x180   : > { %v1616_v55 = vpop.f32.mrf.mxu1 }
 0x181   : > { %v1571_v1 = vpop.f32.mrf.mxu0  ;;  %v1673_v8 = vpop.f32.mrf.mxu2  ;;  %v1617_v62 = vadd.f32 %v1616_v55, %v1568_v28 }
 0x182   : > { %v1572_v57 = vadd.f32 %v1571_v1, %v1489_v18 }
 0x183   : > { %v1674_v15 = vadd.f32 %v1673_v8, %v1617_v62 }
 0x184   : > { %v1794_v12 = vpop.f32.mrf.mxu3 }
 0x185   : > { %v1795_v16 = vadd.f32 %v1794_v12, %v1674_v15 }
 0x18a   : > { %v1620_v59 = vpop.f32.mrf.mxu1 }
 0x18b   : > { %v1575_v60 = vpop.f32.mrf.mxu0  ;;  %v1681_v38 = vpop.f32.mrf.mxu2  ;;  %v1621_v36 = vadd.f32 %v1620_v59, %v1572_v57 }
 0x18c   : > { %v1576_v56 = vadd.f32 %v1575_v60, %v1495_v39 }
 0x18d   : > { %v1682_v21 = vadd.f32 %v1681_v38, %v1621_v36 }
 0x18e   : > { %v1798_v52 = vpop.f32.mrf.mxu3 }
 0x18f   : > { %v1799_v2 = vadd.f32 %v1798_v52, %v1682_v21 }
 0x194   : > { %v1624_v22 = vpop.f32.mrf.mxu1 }
 0x195   : > { %v1856_v44 = vpop.f32.mrf.mxu0  ;;  %v1689_v63 = vpop.f32.mrf.mxu2  ;;  %v1625_v54 = vadd.f32 %v1624_v22, %v1576_v56 }
 0x196   : > { %v1857_v58 = vadd.f32 %v1856_v44, %v1791_v48 }
 0x197   : > { %v1690_v23 = vadd.f32 %v1689_v63, %v1625_v54 }
 0x198   : > { %v1802_v29 = vpop.f32.mrf.mxu3 }
 0x199   : > { %v1803_v49 = vadd.f32 %v1802_v29, %v1690_v23 }
 0x19c   : > { %v1910_v46 = vpop.f32.mrf.mxu1 }
 0x19d   : > { %v1861_v20 = vpop.f32.mrf.mxu0  ;;  %v1911_v32 = vadd.f32 %v1910_v46, %v1857_v58 }
 0x19e   : > { %v1862_v13 = vadd.f32 %v1861_v20, %v1795_v16 }
 0x19f   : > { %v1997_v25 = vpop.f32.mrf.mxu2 }
 0x1a0   : > { %v1998_v51 = vadd.f32 %v1997_v25, %v1911_v32 }
 0x1a1   : > { %v2046_v33 = vpop.f32.mrf.mxu3 }
 0x1a2   : > { %v2047_v27 = vadd.f32 %v2046_v33, %v1998_v51 }
 0x1a4   : > { %2209 = vst [vmem:[%s3883_s1 + $0x20] sm:$0xff] %v2047_v27  ;;  %v1916_v7 = vpop.f32.mrf.mxu1 }
 0x1a5   : > { %v1917_v11 = vadd.f32 %v1916_v7, %v1862_v13  ;;  %v1866_v10 = vpop.f32.mrf.mxu0 }
 0x1a6   : > { %v1867_v47 = vadd.f32 %v1866_v10, %v1799_v2 }
 0x1a7   : > { %v2001_v45 = vpop.f32.mrf.mxu2 }
 0x1a8   : > { %v2002_v5 = vadd.f32 %v2001_v45, %v1917_v11 }
 0x1a9   : > { %v2050_v4 = vpop.f32.mrf.mxu3 }
 0x1aa   : > { %v2051_v61 = vadd.f32 %v2050_v4, %v2002_v5 }
 0x1ac   : > { %2210 = vst [vmem:[%s3883_s1 + $0x28] sm:$0xff] %v2051_v61  ;;  %v1922_v31 = vpop.f32.mrf.mxu1 }
 0x1ad   : > { %v1923_v9 = vadd.f32 %v1922_v31, %v1867_v47  ;;  %v1871_v19 = vpop.f32.mrf.mxu0 }
 0x1ae   : > { %v1872_v12 = vadd.f32 %v1871_v19, %v1803_v49 }
 0x1af   : > { %v2005_v3 = vpop.f32.mrf.mxu2 }
 0x1b0   : > { %v2006_v55 = vadd.f32 %v2005_v3, %v1923_v9 }
 0x1b1   : > { %v2054_v1 = vpop.f32.mrf.mxu3 }
 0x1b2   : > { %v2055_v8 = vadd.f32 %v2054_v1, %v2006_v55 }
 0x1b4   : > { %2211 = vst [vmem:[%s3883_s1 + $0x30] sm:$0xff] %v2055_v8  ;;  %v1928_v26 = vpop.f32.mrf.mxu1 }
 0x1b5   : > { %v1929_v30 = vadd.f32 %v1928_v26, %v1872_v12 }
 0x1b7   : > { %v2009_v42 = vpop.f32.mrf.mxu2 }
 0x1b8   : > { %v2010_v59 = vadd.f32 %v2009_v42, %v1929_v30 }
 0x1b9   : > { %v2058_v60 = vpop.f32.mrf.mxu3 }
 0x1ba   : > { %v2059_v38 = vadd.f32 %v2058_v60, %v2010_v59 }
 0x1bc   : > { %2212 = vst [vmem:[%s3883_s1 + $0x38] sm:$0xff] %v2059_v38 }
 0x1bd   : > { %2424 = shalt.err (!%p2421_p0)
}
 0x1be   : > { %s2489_s11 = smov 128   ;;  %s2490_s26 = smov 8  }
 0x1bf   : > { %2230 = dma.vmem_to_hbm [thread:$0]  (%p2597_p7), %s2086_s7, 1024, %s2088_s25, %s2071_s15, %s2489_s11, %s2489_s11, %s2490_s26  }
 0x1c0 PF: > { %s2102_s28 = sand.u32 1, %s2463_s12   ;;  %p2244_p3 = pnand %p2200_p11, %p2560_p6 }
 0x1c1   : > { %s2103_s18 = scalar_lea.sflag [#allocation4], %s2102_s28 }
 0x1c2   : > { %p2245_p5 = pneg %p2244_p3 }
 0x1c4   : > { %2458 = dma.done.wait (%p2245_p5), %s2103_s18, 1024  }
 0x1c5   : > { %2460 = vsyncadd (%p2245_p5), %s2103_s18, 4294966272  ;;  %s20_s17 = sadd.s32 1, %s2483_s17   ;;  %s4180_s12 = smov %s2467_s13 }
 0x1c6   : > { %p17_p9 = scmp.ge.s32.totalorder %s20_s17, 4   ;;  %s4181_s13 = smov %s2471_s14 }
 0x1c7   : > { %s4182_s14 = smov %s2606_s29  ;;  %s4183_s15 = smov %s2479_s16 }
 0x1c8   : > { %s4184_s16 = smov %s4186_s10  ;;  %19 = sbr.rel (!%p17_p9) target bundleno = 9 (0x9), region = 86 }
 0x1cd   :  { %2109 = vsyncpa [#allocation3], 1 }
 0x1ce   :  { %2111 = vsyncpa [#allocation3 + $0x1], 1 }
 0x1cf   :  { %2112 = vsyncpa [#allocation6], 1 }
 0x1d0   :  { %2113 = vsyncpa [#allocation4], 1 }
 0x1d1   :  { %2115 = vsyncpa [#allocation4 + $0x1], 1 }

</bundles_post_ra>
